<compile_context>
chip_gen: v5e
topology: v5e:2x2
jax: 0.10.0
libtpu: 0.0.40
codegen_flags: <defaults>
</compile_context>

<pallas_src>
import math
import functools

import jax
import jax.numpy as jnp
from jax import lax
from jax.experimental import pallas as pl
from jax.experimental.pallas import tpu as pltpu


def _attention_kernel(x_ref, wq_ref, wk_ref, wv_ref, wo_ref, cos_ref, sin_ref,
                      o_ref, qrot_ref, krot_ref, v_ref, attn_ref, *,
                      n_heads, n_kv_heads, head_dim, compute_dtype,
                      approx_recip):
    """One grid step processes one batch element."""
    n_rep = n_heads // n_kv_heads
    S = x_ref.shape[1]
    hd = head_dim
    hd2 = hd // 2

    # ---- QKV projections: 3 lane-dense MXU matmuls, f32 accumulation. ----
    # (1/sqrt(head_dim) is already folded into wq by the wrapper; x and the
    # weights arrive pre-cast to compute_dtype.)
    x = x_ref[0]                                                        # (S, D)
    q = jnp.dot(x, wq_ref[...], preferred_element_type=jnp.float32)    # (S, Hq*hd)
    k = jnp.dot(x, wk_ref[...], preferred_element_type=jnp.float32)    # (S, Hkv*hd)
    # V goes straight into its compute_dtype slab (no f32 value kept live
    # across the head loop).
    v_ref[...] = jnp.dot(x, wv_ref[...],
                         preferred_element_type=jnp.float32).astype(compute_dtype)

    cos = cos_ref[...]                                                  # (S, hd/2) f32
    sin = sin_ref[...]

    # ---- RoPE in rotate-half layout (wq/wk columns pre-permuted). ----
    # Pure f32 VPU math; each head is assembled into a single (S, hd) value
    # and written with ONE store into the compute_dtype slab.
    def rope_into(slab_ref, t, h):
        tr = t[:, h * hd:h * hd + hd2]            # real half of head h
        ti = t[:, h * hd + hd2:(h + 1) * hd]      # imag half of head h
        rot = jnp.concatenate([tr * cos - ti * sin, tr * sin + ti * cos], axis=1)
        slab_ref[:, h * hd:(h + 1) * hd] = rot.astype(compute_dtype)

    # TODO(synk): switch to lax.fori_loop / a head grid axis once n_heads is
    # realistic (e.g. 32).
    for h in range(n_heads):
        rope_into(qrot_ref, q, h)
    for h in range(n_kv_heads):                   # once per KV head, not per Q head
        rope_into(krot_ref, k, h)

    row = lax.broadcasted_iota(jnp.int32, (S, S), 0)
    col = lax.broadcasted_iota(jnp.int32, (S, S), 1)
    causal = col <= row
    # Large finite negative (not -inf): robust if a padding/segment mask is
    # ever added (avoids exp(-inf - (-inf)) = NaN on fully-masked rows).
    masked = jnp.float32(-1e30)

    # ---- Per-head causal attention; outputs staged into the attn slab. ----
    # Per-head (S, hd) slices are read directly from the VMEM slabs so nothing
    # full-width stays live across the unrolled loop.
    for h in range(n_heads):
        kvh = h // n_rep                          # repeat_kv (GQA) mapping
        qh = qrot_ref[:, h * hd:(h + 1) * hd]     # (S, hd) compute_dtype
        kh = krot_ref[:, kvh * hd:(kvh + 1) * hd]

        # NT matmul (contract last dim of both): no materialized kh.T / XLU.
        s = lax.dot_general(qh, kh,
                            dimension_numbers=(((1,), (1,)), ((), ())),
                            preferred_element_type=jnp.float32)        # (S, S) f32
        s = jnp.where(causal, s, masked)
        m = jnp.max(s, axis=-1, keepdims=True)
        p = jnp.exp(s - m)                                             # unnormalized
        l = jnp.sum(p, axis=-1, keepdims=True)                         # (S, 1)

        out_h = jnp.dot(p.astype(compute_dtype),
                        v_ref[:, kvh * hd:(kvh + 1) * hd],
                        preferred_element_type=jnp.float32)            # (S, hd)
        # Deferred softmax normalization: scale the (S, hd) output, not (S, S).
        out_h = out_h * pl.reciprocal(l, approx=approx_recip)
        attn_ref[:, h * hd:(h + 1) * hd] = out_h.astype(compute_dtype)

    # ---- Fused output projection: ONE (S, Hq*hd) @ (Hq*hd, D) matmul. ----
    out = jnp.dot(attn_ref[...], wo_ref[...], preferred_element_type=jnp.float32)
    o_ref[0] = out.astype(o_ref.dtype)


def attention_forward(x, wq_t, wk_t, wv_t, wo_t, freqs_cos, freqs_sin, *,
                      n_heads, n_kv_heads,
                      compute_dtype=jnp.bfloat16, approx_recip=True,
                      out_dtype=None):
    """x: (B, S, D); w*_t: transposed nn.Linear weights (in, out);
    freqs_cos / freqs_sin: (S, head_dim//2) rotary tables (llama2.c layout)."""
    B, S, D = x.shape
    head_dim = D // n_heads
    hd2 = head_dim // 2
    out_dtype = x.dtype if out_dtype is None else out_dtype

    # Per-head column permutation: interleaved (r0,i0,r1,i1,...) -> rotate-half
    # ([r0..r_{hd/2-1}] | [i0..i_{hd/2-1}]).  Applied identically to wq and wk,
    # so per-head q.k scores are unchanged; wo/wv need no permutation.
    def head_perm(nh):
        base = (jnp.arange(nh, dtype=jnp.int32) * head_dim)[:, None]    # (nh, 1)
        ev = jnp.arange(hd2, dtype=jnp.int32) * 2                       # real cols
        od = ev + 1                                                     # imag cols
        return (jnp.concatenate([ev, od])[None, :] + base).reshape(-1)

    scale = 1.0 / math.sqrt(head_dim)
    wq_p = (wq_t[:, head_perm(n_heads)] * scale).astype(compute_dtype)
    wk_p = wk_t[:, head_perm(n_kv_heads)].astype(compute_dtype)
    wv_c = wv_t.astype(compute_dtype)
    wo_c = wo_t.astype(compute_dtype)
    x_c = x.astype(compute_dtype)          # halves x HBM<->VMEM DMA in bf16

    cos = freqs_cos.astype(jnp.float32)
    sin = freqs_sin.astype(jnp.float32)

    kernel = functools.partial(
        _attention_kernel, n_heads=n_heads, n_kv_heads=n_kv_heads,
        head_dim=head_dim, compute_dtype=compute_dtype,
        approx_recip=approx_recip)

    def const_spec(shape):
        # Grid-invariant (weights / rotary tables): single-buffered.
        return pl.BlockSpec(shape, lambda b: (0, 0), pipeline_mode=pl.Buffered(1))

    return pl.pallas_call(
        kernel,
        out_shape=jax.ShapeDtypeStruct((B, S, D), out_dtype),
        grid=(B,),
        in_specs=[
            pl.BlockSpec((1, S, D), lambda b: (b, 0, 0)),
            const_spec((D, n_heads * head_dim)),
            const_spec((D, n_kv_heads * head_dim)),
            const_spec((D, n_kv_heads * head_dim)),
            const_spec((n_heads * head_dim, D)),
            const_spec((S, hd2)),
            const_spec((S, hd2)),
        ],
        out_specs=pl.BlockSpec((1, S, D), lambda b: (b, 0, 0)),
        scratch_shapes=[
            pltpu.VMEM((S, n_heads * head_dim), compute_dtype),     # roped Q slab
            pltpu.VMEM((S, n_kv_heads * head_dim), compute_dtype),  # roped K slab
            pltpu.VMEM((S, n_kv_heads * head_dim), compute_dtype),  # V slab
            pltpu.VMEM((S, n_heads * head_dim), compute_dtype),     # attn-out slab
        ],
        compiler_params=pltpu.CompilerParams(
            dimension_semantics=("parallel",),
            # TODO(synk): re-derive for v7x's 64 MiB VMEM at realistic shapes.
            vmem_limit_bytes=32 * 1024 * 1024,
        ),
    )(x_c, wq_p, wk_p, wv_c, wo_c, cos, sin)


def reference_attention(x, wq_t, wk_t, wv_t, wo_t, freqs_cos, freqs_sin,
                        *, n_heads, n_kv_heads):
    """Pure-JAX mirror of the PyTorch Attention.forward (eval mode, dropout=0)."""
    B, S, D = x.shape
    hd = D // n_heads
    n_rep = n_heads // n_kv_heads

    xq = (x @ wq_t).reshape(B, S, n_heads, hd)
    xk = (x @ wk_t).reshape(B, S, n_kv_heads, hd)
    xv = (x @ wv_t).reshape(B, S, n_kv_heads, hd)

    def rope(t):
        tr = t.reshape(t.shape[:-1] + (hd // 2, 2))
        t_r, t_i = tr[..., 0], tr[..., 1]
        c = freqs_cos[None, :, None, :]
        s = freqs_sin[None, :, None, :]
        o_r = t_r * c - t_i * s
        o_i = t_r * s + t_i * c
        return jnp.stack([o_r, o_i], axis=-1).reshape(t.shape)

    xq, xk = rope(xq), rope(xk)
    xk = jnp.repeat(xk, n_rep, axis=2)
    xv = jnp.repeat(xv, n_rep, axis=2)
    xq = xq.transpose(0, 2, 1, 3)
    xk = xk.transpose(0, 2, 1, 3)
    xv = xv.transpose(0, 2, 1, 3)

    scores = (xq @ xk.transpose(0, 1, 3, 2)) / math.sqrt(hd)
    mask = jnp.tril(jnp.ones((S, S), dtype=bool))
    scores = jnp.where(mask[None, None], scores, -jnp.inf)
    p = jax.nn.softmax(scores, axis=-1)
    out = (p @ xv).transpose(0, 2, 1, 3).reshape(B, S, -1)
    return out @ wo_t


if __name__ == "__main__":
    # Small llama-consistent shapes; head_dim=128 keeps every per-head slab
    # slice / store 128-lane aligned (one unmasked vst per head).
    B, S, dim = 2, 16, 256
    n_heads, n_kv_heads = 2, 1
    head_dim = dim // n_heads                     # 128

    key = jax.random.PRNGKey(0)
    kx, kq, kk, kv, ko = jax.random.split(key, 5)

    x = jax.random.normal(kx, (B, S, dim), dtype=jnp.float32)
    # nn.Linear weights are (out, in); pass transposed (in, out) so kernel does x @ W.
    wq_t = 0.02 * jax.random.normal(kq, (dim, n_heads * head_dim), dtype=jnp.float32)
    wk_t = 0.02 * jax.random.normal(kk, (dim, n_kv_heads * head_dim), dtype=jnp.float32)
    wv_t = 0.02 * jax.random.normal(kv, (dim, n_kv_heads * head_dim), dtype=jnp.float32)
    wo_t = 0.02 * jax.random.normal(ko, (n_heads * head_dim, dim), dtype=jnp.float32)

    # Precomputed rotary tables (as in llama2.c precompute_freqs_cis).
    inv_freq = 1.0 / (10000.0 ** (jnp.arange(0, head_dim, 2, dtype=jnp.float32) / head_dim))
    t = jnp.arange(S, dtype=jnp.float32)
    freqs = jnp.outer(t, inv_freq)                # (S, head_dim // 2)
    freqs_cos = jnp.cos(freqs)
    freqs_sin = jnp.sin(freqs)

    ref = reference_attention(x, wq_t, wk_t, wv_t, wo_t, freqs_cos, freqs_sin,
                              n_heads=n_heads, n_kv_heads=n_kv_heads)

    # 1) Exact f32 path: validates the algorithm (rotate-half RoPE permutation,
    #    GQA mapping, causal softmax with deferred normalization, fused wo)
    #    against the f32 reference.
    out_f32 = attention_forward(x, wq_t, wk_t, wv_t, wo_t, freqs_cos, freqs_sin,
                                n_heads=n_heads, n_kv_heads=n_kv_heads,
                                compute_dtype=jnp.float32, approx_recip=False)
    out_f32 = jax.block_until_ready(out_f32)
    assert out_f32.shape == (B, S, dim)
    assert jnp.allclose(out_f32, ref, rtol=1e-4, atol=1e-4), "f32 path mismatch"

    # 2) Default performance path: bf16 slabs / MXU inputs / I-O, f32 softmax
    #    and accumulation, EUP approximate reciprocal.  Loose tolerance covers
    #    bf16 rounding accumulated across three chained K=256/128 matmuls.
    out_bf16 = attention_forward(x, wq_t, wk_t, wv_t, wo_t, freqs_cos, freqs_sin,
                                 n_heads=n_heads, n_kv_heads=n_kv_heads,
                                 out_dtype=jnp.bfloat16)
    out_bf16 = jax.block_until_ready(out_bf16)
    assert out_bf16.shape == (B, S, dim)
    assert out_bf16.dtype == jnp.bfloat16
    assert jnp.allclose(out_bf16.astype(jnp.float32), ref,
                        rtol=3e-2, atol=3e-2), "bf16 path mismatch"

    print("KERNEL_OK")
</pallas_src>

<mosaic_0001>
module attributes {stable_mosaic.version = 11 : i64} {
  func.func @_attention_kernel(%arg0: i32, %arg1: memref<1x16x256xf32, #tpu.memory_space<vmem>>, %arg2: memref<256x256xf32, #tpu.memory_space<vmem>>, %arg3: memref<256x128xf32, #tpu.memory_space<vmem>>, %arg4: memref<256x128xf32, #tpu.memory_space<vmem>>, %arg5: memref<256x256xf32, #tpu.memory_space<vmem>>, %arg6: memref<16x64xf32, #tpu.memory_space<vmem>>, %arg7: memref<16x64xf32, #tpu.memory_space<vmem>>, %arg8: memref<1x16x256xf32, #tpu.memory_space<vmem>>, %arg9: memref<16x256xf32, #tpu.memory_space<vmem>>, %arg10: memref<16x128xf32, #tpu.memory_space<vmem>>, %arg11: memref<16x128xf32, #tpu.memory_space<vmem>>, %arg12: memref<16x256xf32, #tpu.memory_space<vmem>>) attributes {dimension_semantics = [#tpu.dimension_semantics<parallel>], iteration_bounds = array<i64: 2>, scalar_prefetch = 0 : i64, scratch_operands = 4 : i64, tpu.core_type = #tpu.core_type<tc>, window_params = [{transform_indices = @transform_0, window_bounds = array<i64: 1, 16, 256>}, {pipeline_mode = #tpu.pipeline_mode<synchronous>, transform_indices = @transform_1, window_bounds = array<i64: 256, 256>}, {pipeline_mode = #tpu.pipeline_mode<synchronous>, transform_indices = @transform_2, window_bounds = array<i64: 256, 128>}, {pipeline_mode = #tpu.pipeline_mode<synchronous>, transform_indices = @transform_3, window_bounds = array<i64: 256, 128>}, {pipeline_mode = #tpu.pipeline_mode<synchronous>, transform_indices = @transform_4, window_bounds = array<i64: 256, 256>}, {pipeline_mode = #tpu.pipeline_mode<synchronous>, transform_indices = @transform_5, window_bounds = array<i64: 16, 64>}, {pipeline_mode = #tpu.pipeline_mode<synchronous>, transform_indices = @transform_6, window_bounds = array<i64: 16, 64>}, {transform_indices = @transform_7, window_bounds = array<i64: 1, 16, 256>}]} {
    %c0 = arith.constant 0 : index
    %c0_0 = arith.constant 0 : index
    %c0_1 = arith.constant 0 : index
    %0 = vector.load %arg1[%c0, %c0_0, %c0_1] : memref<1x16x256xf32, #tpu.memory_space<vmem>>, vector<1x16x256xf32>
    %1 = vector.shape_cast %0 : vector<1x16x256xf32> to vector<16x256xf32>
    %c0_2 = arith.constant 0 : index
    %c0_3 = arith.constant 0 : index
    %2 = vector.load %arg2[%c0_2, %c0_3] : memref<256x256xf32, #tpu.memory_space<vmem>>, vector<256x256xf32>
    %cst = arith.constant dense<0.000000e+00> : vector<16x256xf32>
    %3 = tpu.matmul %1, %2, %cst {dimension_numbers = #tpu.dot_dimension_numbers<[1], [0], [0], [1], [0, 0, 1, 1], [], []>} : vector<16x256xf32>, vector<256x256xf32>, vector<16x256xf32> -> vector<16x256xf32>
    %c0_4 = arith.constant 0 : index
    %c0_5 = arith.constant 0 : index
    %4 = vector.load %arg3[%c0_4, %c0_5] : memref<256x128xf32, #tpu.memory_space<vmem>>, vector<256x128xf32>
    %cst_6 = arith.constant dense<0.000000e+00> : vector<16x128xf32>
    %5 = tpu.matmul %1, %4, %cst_6 {dimension_numbers = #tpu.dot_dimension_numbers<[1], [0], [0], [1], [0, 0, 1, 1], [], []>} : vector<16x256xf32>, vector<256x128xf32>, vector<16x128xf32> -> vector<16x128xf32>
    %c0_7 = arith.constant 0 : index
    %c0_8 = arith.constant 0 : index
    %6 = vector.load %arg4[%c0_7, %c0_8] : memref<256x128xf32, #tpu.memory_space<vmem>>, vector<256x128xf32>
    %cst_9 = arith.constant dense<0.000000e+00> : vector<16x128xf32>
    %7 = tpu.matmul %1, %6, %cst_9 {dimension_numbers = #tpu.dot_dimension_numbers<[1], [0], [0], [1], [0, 0, 1, 1], [], []>} : vector<16x256xf32>, vector<256x128xf32>, vector<16x128xf32> -> vector<16x128xf32>
    %c0_10 = arith.constant 0 : index
    %c0_11 = arith.constant 0 : index
    %8 = vector.load %arg11[%c0_10, %c0_11] : memref<16x128xf32, #tpu.memory_space<vmem>>, vector<16x128xf32>
    tpu.vector_store %arg11[%c0_10, %c0_11], %7 {strides = array<i32>} : memref<16x128xf32, #tpu.memory_space<vmem>>, vector<16x128xf32>,
    %c0_12 = arith.constant 0 : index
    %c0_13 = arith.constant 0 : index
    %9 = vector.load %arg6[%c0_12, %c0_13] : memref<16x64xf32, #tpu.memory_space<vmem>>, vector<16x64xf32>
    %c0_14 = arith.constant 0 : index
    %c0_15 = arith.constant 0 : index
    %10 = vector.load %arg7[%c0_14, %c0_15] : memref<16x64xf32, #tpu.memory_space<vmem>>, vector<16x64xf32>
    %11 = vector.extract_strided_slice %3 {offsets = [0, 0], sizes = [16, 64], strides = [1, 1]} : vector<16x256xf32> to vector<16x64xf32>
    %12 = vector.extract_strided_slice %3 {offsets = [0, 64], sizes = [16, 64], strides = [1, 1]} : vector<16x256xf32> to vector<16x64xf32>
    %13 = arith.mulf %11, %9 : vector<16x64xf32>
    %14 = arith.mulf %12, %10 : vector<16x64xf32>
    %15 = arith.subf %13, %14 : vector<16x64xf32>
    %16 = arith.mulf %11, %10 : vector<16x64xf32>
    %17 = arith.mulf %12, %9 : vector<16x64xf32>
    %18 = arith.addf %16, %17 : vector<16x64xf32>
    %19 = tpu.concatenate %15, %18 in 1 : vector<16x64xf32>, vector<16x64xf32> -> vector<16x128xf32>
    %c0_16 = arith.constant 0 : index
    %c0_17 = arith.constant 0 : index
    %20 = vector.load %arg9[%c0_16, %c0_17] : memref<16x256xf32, #tpu.memory_space<vmem>>, vector<16x128xf32>
    tpu.vector_store %arg9[%c0_16, %c0_17], %19 {strides = array<i32>} : memref<16x256xf32, #tpu.memory_space<vmem>>, vector<16x128xf32>,
    %21 = vector.extract_strided_slice %3 {offsets = [0, 128], sizes = [16, 64], strides = [1, 1]} : vector<16x256xf32> to vector<16x64xf32>
    %22 = vector.extract_strided_slice %3 {offsets = [0, 192], sizes = [16, 64], strides = [1, 1]} : vector<16x256xf32> to vector<16x64xf32>
    %23 = arith.mulf %21, %9 : vector<16x64xf32>
    %24 = arith.mulf %22, %10 : vector<16x64xf32>
    %25 = arith.subf %23, %24 : vector<16x64xf32>
    %26 = arith.mulf %21, %10 : vector<16x64xf32>
    %27 = arith.mulf %22, %9 : vector<16x64xf32>
    %28 = arith.addf %26, %27 : vector<16x64xf32>
    %29 = tpu.concatenate %25, %28 in 1 : vector<16x64xf32>, vector<16x64xf32> -> vector<16x128xf32>
    %c0_18 = arith.constant 0 : index
    %c128 = arith.constant 128 : index
    %30 = vector.load %arg9[%c0_18, %c128] : memref<16x256xf32, #tpu.memory_space<vmem>>, vector<16x128xf32>
    tpu.vector_store %arg9[%c0_18, %c128], %29 {strides = array<i32>} : memref<16x256xf32, #tpu.memory_space<vmem>>, vector<16x128xf32>,
    %31 = vector.extract_strided_slice %5 {offsets = [0, 0], sizes = [16, 64], strides = [1, 1]} : vector<16x128xf32> to vector<16x64xf32>
    %32 = vector.extract_strided_slice %5 {offsets = [0, 64], sizes = [16, 64], strides = [1, 1]} : vector<16x128xf32> to vector<16x64xf32>
    %33 = arith.mulf %31, %9 : vector<16x64xf32>
    %34 = arith.mulf %32, %10 : vector<16x64xf32>
    %35 = arith.subf %33, %34 : vector<16x64xf32>
    %36 = arith.mulf %31, %10 : vector<16x64xf32>
    %37 = arith.mulf %32, %9 : vector<16x64xf32>
    %38 = arith.addf %36, %37 : vector<16x64xf32>
    %39 = tpu.concatenate %35, %38 in 1 : vector<16x64xf32>, vector<16x64xf32> -> vector<16x128xf32>
    %c0_19 = arith.constant 0 : index
    %c0_20 = arith.constant 0 : index
    %40 = vector.load %arg10[%c0_19, %c0_20] : memref<16x128xf32, #tpu.memory_space<vmem>>, vector<16x128xf32>
    tpu.vector_store %arg10[%c0_19, %c0_20], %39 {strides = array<i32>} : memref<16x128xf32, #tpu.memory_space<vmem>>, vector<16x128xf32>,
    %41 = tpu.iota {dimensions = array<i32: 0>} : vector<16x16xi32>
    %42 = tpu.iota {dimensions = array<i32: 1>} : vector<16x16xi32>
    %43 = arith.cmpi sle, %42, %41 : vector<16x16xi32>
    %c0_21 = arith.constant 0 : index
    %c0_22 = arith.constant 0 : index
    %44 = vector.load %arg9[%c0_21, %c0_22] : memref<16x256xf32, #tpu.memory_space<vmem>>, vector<16x128xf32>
    %c0_23 = arith.constant 0 : index
    %c0_24 = arith.constant 0 : index
    %45 = vector.load %arg10[%c0_23, %c0_24] : memref<16x128xf32, #tpu.memory_space<vmem>>, vector<16x128xf32>
    %cst_25 = arith.constant dense<0.000000e+00> : vector<16x16xf32>
    %46 = tpu.matmul %44, %45, %cst_25 {dimension_numbers = #tpu.dot_dimension_numbers<[1], [1], [0], [0], [0, 0, 1, 0], [], []>} : vector<16x128xf32>, vector<16x128xf32>, vector<16x16xf32> -> vector<16x16xf32>
    %cst_26 = arith.constant -1.000000e+30 : f32
    %47 = vector.broadcast %cst_26 : f32 to vector<16x16xf32>
    %48 = arith.select %43, %46, %47 : vector<16x16xi1>, vector<16x16xf32>
    %cst_27 = arith.constant dense<0xFF800000> : vector<16xf32>
    %49 = vector.multi_reduction <maximumf>, %48, %cst_27 [1] : vector<16x16xf32> to vector<16xf32>
    %50 = vector.shape_cast %49 : vector<16xf32> to vector<16x1xf32>
    %51 = vector.broadcast %50 : vector<16x1xf32> to vector<16x16xf32>
    %52 = arith.subf %48, %51 : vector<16x16xf32>
    %53 = math.exp %52 : vector<16x16xf32>
    %cst_28 = arith.constant dense<0.000000e+00> : vector<16xf32>
    %54 = vector.multi_reduction <add>, %53, %cst_28 [1] : vector<16x16xf32> to vector<16xf32>
    %55 = vector.shape_cast %54 : vector<16xf32> to vector<16x1xf32>
    %c0_29 = arith.constant 0 : index
    %c0_30 = arith.constant 0 : index
    %56 = vector.load %arg11[%c0_29, %c0_30] : memref<16x128xf32, #tpu.memory_space<vmem>>, vector<16x128xf32>
    %cst_31 = arith.constant dense<0.000000e+00> : vector<16x128xf32>
    %57 = tpu.matmul %53, %56, %cst_31 {dimension_numbers = #tpu.dot_dimension_numbers<[1], [0], [0], [1], [0, 0, 1, 1], [], []>} : vector<16x16xf32>, vector<16x128xf32>, vector<16x128xf32> -> vector<16x128xf32>
    %58 = tpu.reciprocal %55 : vector<16x1xf32> -> vector<16x1xf32>
    %59 = vector.broadcast %58 : vector<16x1xf32> to vector<16x128xf32>
    %60 = arith.mulf %57, %59 : vector<16x128xf32>
    %c0_32 = arith.constant 0 : index
    %c0_33 = arith.constant 0 : index
    %61 = vector.load %arg12[%c0_32, %c0_33] : memref<16x256xf32, #tpu.memory_space<vmem>>, vector<16x128xf32>
    tpu.vector_store %arg12[%c0_32, %c0_33], %60 {strides = array<i32>} : memref<16x256xf32, #tpu.memory_space<vmem>>, vector<16x128xf32>,
    %c0_34 = arith.constant 0 : index
    %c128_35 = arith.constant 128 : index
    %62 = vector.load %arg9[%c0_34, %c128_35] : memref<16x256xf32, #tpu.memory_space<vmem>>, vector<16x128xf32>
    %c0_36 = arith.constant 0 : index
    %c0_37 = arith.constant 0 : index
    %63 = vector.load %arg10[%c0_36, %c0_37] : memref<16x128xf32, #tpu.memory_space<vmem>>, vector<16x128xf32>
    %cst_38 = arith.constant dense<0.000000e+00> : vector<16x16xf32>
    %64 = tpu.matmul %62, %63, %cst_38 {dimension_numbers = #tpu.dot_dimension_numbers<[1], [1], [0], [0], [0, 0, 1, 0], [], []>} : vector<16x128xf32>, vector<16x128xf32>, vector<16x16xf32> -> vector<16x16xf32>
    %cst_39 = arith.constant -1.000000e+30 : f32
    %65 = vector.broadcast %cst_39 : f32 to vector<16x16xf32>
    %66 = arith.select %43, %64, %65 : vector<16x16xi1>, vector<16x16xf32>
    %cst_40 = arith.constant dense<0xFF800000> : vector<16xf32>
    %67 = vector.multi_reduction <maximumf>, %66, %cst_40 [1] : vector<16x16xf32> to vector<16xf32>
    %68 = vector.shape_cast %67 : vector<16xf32> to vector<16x1xf32>
    %69 = vector.broadcast %68 : vector<16x1xf32> to vector<16x16xf32>
    %70 = arith.subf %66, %69 : vector<16x16xf32>
    %71 = math.exp %70 : vector<16x16xf32>
    %cst_41 = arith.constant dense<0.000000e+00> : vector<16xf32>
    %72 = vector.multi_reduction <add>, %71, %cst_41 [1] : vector<16x16xf32> to vector<16xf32>
    %73 = vector.shape_cast %72 : vector<16xf32> to vector<16x1xf32>
    %c0_42 = arith.constant 0 : index
    %c0_43 = arith.constant 0 : index
    %74 = vector.load %arg11[%c0_42, %c0_43] : memref<16x128xf32, #tpu.memory_space<vmem>>, vector<16x128xf32>
    %cst_44 = arith.constant dense<0.000000e+00> : vector<16x128xf32>
    %75 = tpu.matmul %71, %74, %cst_44 {dimension_numbers = #tpu.dot_dimension_numbers<[1], [0], [0], [1], [0, 0, 1, 1], [], []>} : vector<16x16xf32>, vector<16x128xf32>, vector<16x128xf32> -> vector<16x128xf32>
    %76 = tpu.reciprocal %73 : vector<16x1xf32> -> vector<16x1xf32>
    %77 = vector.broadcast %76 : vector<16x1xf32> to vector<16x128xf32>
    %78 = arith.mulf %75, %77 : vector<16x128xf32>
    %c0_45 = arith.constant 0 : index
    %c128_46 = arith.constant 128 : index
    %79 = vector.load %arg12[%c0_45, %c128_46] : memref<16x256xf32, #tpu.memory_space<vmem>>, vector<16x128xf32>
    tpu.vector_store %arg12[%c0_45, %c128_46], %78 {strides = array<i32>} : memref<16x256xf32, #tpu.memory_space<vmem>>, vector<16x128xf32>,
    %c0_47 = arith.constant 0 : index
    %c0_48 = arith.constant 0 : index
    %80 = vector.load %arg12[%c0_47, %c0_48] : memref<16x256xf32, #tpu.memory_space<vmem>>, vector<16x256xf32>
    %c0_49 = arith.constant 0 : index
    %c0_50 = arith.constant 0 : index
    %81 = vector.load %arg5[%c0_49, %c0_50] : memref<256x256xf32, #tpu.memory_space<vmem>>, vector<256x256xf32>
    %cst_51 = arith.constant dense<0.000000e+00> : vector<16x256xf32>
    %82 = tpu.matmul %80, %81, %cst_51 {dimension_numbers = #tpu.dot_dimension_numbers<[1], [0], [0], [1], [0, 0, 1, 1], [], []>} : vector<16x256xf32>, vector<256x256xf32>, vector<16x256xf32> -> vector<16x256xf32>
    %c0_52 = arith.constant 0 : index
    %c0_53 = arith.constant 0 : index
    %c0_54 = arith.constant 0 : index
    %83 = vector.load %arg8[%c0_52, %c0_53, %c0_54] : memref<1x16x256xf32, #tpu.memory_space<vmem>>, vector<1x16x256xf32>
    %84 = vector.shape_cast %83 : vector<1x16x256xf32> to vector<16x256xf32>
    %85 = vector.shape_cast %82 : vector<16x256xf32> to vector<1x16x256xf32>
    tpu.vector_store %arg8[%c0_52, %c0_53, %c0_54], %85 {strides = array<i32>} : memref<1x16x256xf32, #tpu.memory_space<vmem>>, vector<1x16x256xf32>,
    return
  }
  func.func @transform_0(%arg0: i32) -> (i32, i32, i32) {
    %c0_i32 = arith.constant 0 : i32
    %c0_i32_0 = arith.constant 0 : i32
    %c0_i32_1 = arith.constant 0 : i32
    return %arg0, %c0_i32, %c0_i32_0 : i32, i32, i32
  }
  func.func @transform_1(%arg0: i32) -> (i32, i32) {
    %c0_i32 = arith.constant 0 : i32
    %c0_i32_0 = arith.constant 0 : i32
    %c0_i32_1 = arith.constant 0 : i32
    return %c0_i32, %c0_i32_0 : i32, i32
  }
  func.func @transform_2(%arg0: i32) -> (i32, i32) {
    %c0_i32 = arith.constant 0 : i32
    %c0_i32_0 = arith.constant 0 : i32
    %c0_i32_1 = arith.constant 0 : i32
    return %c0_i32, %c0_i32_0 : i32, i32
  }
  func.func @transform_3(%arg0: i32) -> (i32, i32) {
    %c0_i32 = arith.constant 0 : i32
    %c0_i32_0 = arith.constant 0 : i32
    %c0_i32_1 = arith.constant 0 : i32
    return %c0_i32, %c0_i32_0 : i32, i32
  }
  func.func @transform_4(%arg0: i32) -> (i32, i32) {
    %c0_i32 = arith.constant 0 : i32
    %c0_i32_0 = arith.constant 0 : i32
    %c0_i32_1 = arith.constant 0 : i32
    return %c0_i32, %c0_i32_0 : i32, i32
  }
  func.func @transform_5(%arg0: i32) -> (i32, i32) {
    %c0_i32 = arith.constant 0 : i32
    %c0_i32_0 = arith.constant 0 : i32
    %c0_i32_1 = arith.constant 0 : i32
    return %c0_i32, %c0_i32_0 : i32, i32
  }
  func.func @transform_6(%arg0: i32) -> (i32, i32) {
    %c0_i32 = arith.constant 0 : i32
    %c0_i32_0 = arith.constant 0 : i32
    %c0_i32_1 = arith.constant 0 : i32
    return %c0_i32, %c0_i32_0 : i32, i32
  }
  func.func @transform_7(%arg0: i32) -> (i32, i32, i32) {
    %c0_i32 = arith.constant 0 : i32
    %c0_i32_0 = arith.constant 0 : i32
    %c0_i32_1 = arith.constant 0 : i32
    return %arg0, %c0_i32, %c0_i32_0 : i32, i32, i32
  }
}

</mosaic_0001>

<bundles_post_ra>
// kernel: tpu_custom_call.1
= control target key start
LH: loop header
LB: loop body
LE: loop exit
PB: predicated region body
PF: predicated region fallthrough
CT: control target
= control target key end

     0   :  { %s2246_s0 = inlined_call_operand.hbm [shape: f32[2,16,256], index: 0, kind: input, shape index: {}]   ;;  %s2247_s1 = inlined_call_operand.hbm [shape: f32[256,256], index: 1, kind: input, shape index: {}]   ;;  %s2248_s2 = inlined_call_operand.hbm [shape: f32[256,128], index: 2, kind: input, shape index: {}]   ;;  %s2249_s3 = inlined_call_operand.hbm [shape: f32[256,128], index: 3, kind: input, shape index: {}]   ;;  %s2250_s4 = inlined_call_operand.hbm [shape: f32[256,256], index: 4, kind: input, shape index: {}]   ;;  %s2251_s5 = inlined_call_operand.hbm [shape: f32[16,64], index: 5, kind: input, shape index: {}]   ;;  %s2252_s6 = inlined_call_operand.hbm [shape: f32[16,64], index: 6, kind: input, shape index: {}]   ;;  %s2253_s7 = inlined_call_operand.hbm [shape: f32[2,16,256], index: 7, kind: output, shape index: {}]  }
   0x1   :  { %2256 = sst [smem:[#allocation24_spill]] %s2247_s1 }
   0x2   :  { %2257 = sst [smem:[#allocation25_spill]] %s2248_s2 }
   0x3   :  { %12 = vsyncpa [#allocation7], 0 }
   0x4   :  { %14 = vsyncpa [#allocation7 + $0x1], 0 }
   0x5   :  { %15 = vsyncpa [#allocation10], 0 }
   0x6   :  { %16 = vsyncpa [#allocation13], 0 }
   0x7   :  { %17 = vsyncpa [#allocation16], 0 }
   0x8   :  { %18 = vsyncpa [#allocation8], 0 }
   0x9   :  { %20 = vsyncpa [#allocation8 + $0x1], 0  ;;  %s1905_s24 = smov 0   ;;  %s1907_s25 = smov 0  }
   0xa   :  { %s1909_s26 = smov 0   ;;  %s1911_s27 = smov 0  }
   0xb LB: > { %s2258_s1 = sld [smem:[#allocation24_spill]]  ;;  %s1929_s8 = sadd.s32 4294967295, %s1850_s27   ;;  %s1850_s27 = sphi %s1911_s27, %s2273_s27   ;;  %s1846_s26 = sphi %s1909_s26, %s2272_s26   ;;  %s1842_s25 = sphi %s1907_s25, %s2271_s25   ;;  %s1838_s24 = sphi %s1905_s24, %s2270_s24  }
   0xc   : > { %p1396_p0 = scmp.ge.s32.totalorder %s1850_s27, 1  ;;  %p47_p1 = scmp.eq.s32.totalorder %s1929_s8, 0 }
   0xd   : > { %p209_p2 = scmp.lt.s32.totalorder %s1850_s27, 3  ;;  %s1852_s10 = smov [#allocation9]  }
   0xe   : > { %s222_s11 = sshll.u32 %s1852_s10, 4  ;;  %s248_s15 = sshll.u32 %s2249_s3, 4  ;;  %s223_s11 = int_to_ptr.vmem [resolvable:$true] %s222_s11  ;;  %s249_s15 = int_to_ptr.hbm [resolvable:$true] %s248_s15 }
   0xf   : > { %p1934_p3 = pnand %p1396_p0, %p209_p2  ;;  %s2254_s16 = smov 256  }
  0x10   : > { %s2255_s17 = smov 16   ;;  %s1855_s18 = smov [#allocation12]  }
  0x11   : > { %s220_s30 = sshll.u32 %s2258_s1, 4  ;;  %p1455_p4 = pneg %p1934_p3  ;;  %s221_s30 = int_to_ptr.hbm [resolvable:$true] %s220_s30 }
  0x12   : > { %s250_s19 = sshll.u32 %s1855_s18, 4  ;;  %s276_s22 = sshll.u32 %s2251_s5, 4  ;;  %s251_s19 = int_to_ptr.vmem [resolvable:$true] %s250_s19  ;;  %s277_s22 = int_to_ptr.hbm [resolvable:$true] %s276_s22 }
  0x13   : > { %p1943_p6 = pnand %p1455_p4, %p47_p1  ;;  %s1856_s23 = smov 128  }
  0x14   : > { %s1857_s28 = smov 8   ;;  %s2261_s2 = sld [smem:[#allocation25_spill]] }
  0x15   : > { %1458 = dma.hbm_to_vmem [thread:$0]  (!%p1943_p6), %s221_s30, 8192, %s223_s11, [#allocation10], %s2254_s16, %s2254_s16, %s2255_s17  }
  0x16   : > { %1464 = dma.hbm_to_vmem [thread:$0]  (!%p1943_p6), %s249_s15, 4096, %s251_s19, [#allocation13], %s1856_s23, %s1856_s23, %s1857_s28  }
  0x17   : > { %s1858_s14 = smov [#allocation15]   ;;  %s1859_s11 = smov [#allocation11]  }
  0x18   : > { %s278_s30 = sshll.u32 %s1858_s14, 4  ;;  %s236_s18 = sshll.u32 %s1859_s11, 4  ;;  %s279_s30 = int_to_ptr.vmem [resolvable:$true] %s278_s30  ;;  %s237_s18 = int_to_ptr.vmem [resolvable:$true] %s236_s18 }
  0x19   : > { %1470 = dma.hbm_to_vmem [thread:$0]  (!%p1943_p6), %s277_s22, 256, %s279_s30, [#allocation16], %s1856_s23, %s1856_s23, %s1857_s28  }
  0x1a   : > { %s234_s13 = sshll.u32 %s2261_s2, 4  ;;  %s262_s15 = sshll.u32 %s2250_s4, 4  ;;  %s235_s13 = int_to_ptr.hbm [resolvable:$true] %s234_s13  ;;  %s263_s15 = int_to_ptr.hbm [resolvable:$true] %s262_s15 }
  0x1b   : > { %1461 = dma.hbm_to_vmem [thread:$0]  (!%p1943_p6), %s235_s13, 4096, %s237_s18, [#allocation10], %s1856_s23, %s1856_s23, %s1857_s28  }
  0x1c   : > { %s290_s22 = sshll.u32 %s2252_s6, 4  ;;  %s1860_s10 = smov [#allocation14]   ;;  %s291_s22 = int_to_ptr.hbm [resolvable:$true] %s290_s22 }
  0x1d   : > { %s264_s14 = sshll.u32 %s1860_s10, 4  ;;  %s1861_s13 = smov [#allocation17]   ;;  %s265_s14 = int_to_ptr.vmem [resolvable:$true] %s264_s14 }
  0x1e   : > { %1467 = dma.hbm_to_vmem [thread:$0]  (!%p1943_p6), %s263_s15, 8192, %s265_s14, [#allocation13], %s2254_s16, %s2254_s16, %s2255_s17  }
  0x1f   : > { %s292_s30 = sshll.u32 %s1861_s13, 4  ;;  %s1395_s11 = sadd.s32 4294967294, %s1850_s27   ;;  %s293_s30 = int_to_ptr.vmem [resolvable:$true] %s292_s30 }
  0x20   : > { %1473 = dma.hbm_to_vmem [thread:$0]  (!%p1943_p6), %s291_s22, 256, %s293_s30, [#allocation16], %s1856_s23, %s1856_s23, %s1857_s28  }
  0x21   : > { %s1982_s18 = sadd.s32 1, %s1850_s27   ;;  %s33_s21 = sadd.s32 1, %s1846_s26 }
  0x22   : > { %s30_s20 = ssub.s32 %s1850_s27, %s1982_s18  ;;  %p40_p8 = scmp.ne.s32.totalorder %s1846_s26, %s1842_s25 }
  0x23   : > { %p31_p7 = scmp.eq.s32.totalorder %s30_s20, 0  ;;  %p41_p9 = scmp.eq.s32.totalorder %s1850_s27, 0 }
  0x24   : > { %p46_p10 = scmp.ne.s32.totalorder %s1842_s25, %s1838_s24  ;;  %p196_p13 = scmp.eq.s32.totalorder %s1929_s8, 1 }
  0x25   : > { %s1993_s15 = scalar_select %p31_p7, %s1846_s26, %s33_s21  }
  0x26   : > { %p1995_p11 = por %p41_p9, %p40_p8  ;;  %p2001_p12 = por %p47_p1, %p46_p10 }
  0x27   : > { %p202_p0 = scmp.eq.s32.totalorder %s1395_s11, 1  ;;  %p1488_p2 = scmp.lt.s32.totalorder %s1850_s27, 2 }
  0x28   : > { %s306_s23 = sand.u32 1, %s1846_s26   ;;  %p2008_p4 = por %p196_p13, %p40_p8 }
  0x29   : > { %p2012_p6 = por %p202_p0, %p46_p10  ;;  %s1404_s22 = sshll.u32 %s306_s23, 5 }
  0x2a   : > { %s1425_s10 = sshll.u32 %s1850_s27, 5  ;;  %s310_s20 = scalar_lea.vmem [#allocation6], %s1404_s22 }
  0x2b   : > { %s315_s30 = scalar_lea.hbm %s2246_s0, %s1425_s10  ;;  %s318_s21 = sshll.u32 %s310_s20, 4  ;;  %s319_s21 = int_to_ptr.vmem [resolvable:$true] %s318_s21 }
  0x2c   : > { %s316_s16 = sshll.u32 %s315_s30, 4  ;;  %p2022_p7 = pnand %p1488_p2, %p1995_p11  ;;  %s317_s16 = int_to_ptr.hbm [resolvable:$true] %s316_s16 }
  0x2d   : > { %s307_s17 = scalar_lea.sflag [#allocation7], %s306_s23  ;;  %s1742_s1 = sshra.s32 %s317_s16, 4  ;;  %s1743_s1 = int_to_ptr.hbm [resolvable:$true] %s1742_s1 }
  0x2e   : > { %s1744_s2 = scalar_lea.hbm %s1743_s1, 32  ;;  %p1746_p9 = pneg %p2022_p7 }
  0x2f   : > { %p1745_p8 = scmp.ne.s32.totalorder %s1743_s1, %s1744_s2  ;;  %s1749_s14 = scalar_lea.hbm %s2246_s0, 64 }
  0x30   : > { %p1750_p11 = scmp.lt.s32.totalorder %s1743_s1, %s2246_s0  ;;  %p1751_p0 = scmp.lt.s32.totalorder %s1749_s14, %s1744_s2 }
  0x31   : > { %p1747_p10 = pnand %p1746_p9, %p1745_p8 }
  0x32   : > { %p1752_p2 = por %p1751_p0, %p1750_p11 }
  0x33   : > { %p1748_p13 = pneg %p1747_p10 }
  0x35   : > { %p1753_p5 = pnand %p1752_p2, %p1748_p13 }
  0x37   : > { %1756 = shalt.err (!%p1753_p5)
}
  0x38   : > { %s2267_s23 = smov 16   ;;  %s2268_s30 = smov 256  }
  0x39   : > { %1477 = dma.hbm_to_vmem [thread:$0]  (!%p2022_p7), %s317_s16, 512, %s319_s21, %s307_s17, %s2268_s30, %s2268_s30, %s2267_s23  }
  0x3a   : > { %330 = sbr.rel (%p1934_p3) target bundleno = 1057 (0x421), region = 48  ;;  %s2042_s20 = sand.u32 (!%p1934_p3), 1, %s1842_s25  }
  0x3b   : > { %s1408_s1 = sshll.u32 (!%p1934_p3), %s2042_s20, 5  ;;  %s333_s2 = scalar_lea.sflag (!%p1934_p3), [#allocation7], %s2042_s20 }
  0x3c   : > { %s2048_s22 = scalar_lea.vmem (!%p1934_p3), [#allocation6], %s1408_s1 }
  0x3f   : > { %1817 = dma.done.wait (%p2001_p12), %s333_s2, 512  }
  0x40   : > { %1819 = vsyncadd (%p2001_p12), %s333_s2, 4294966784 }
  0x41   : > { %1821 = dma.done.wait (%p47_p1), [#allocation10], 12288  }
  0x42   : > { %1823 = vsyncadd (%p47_p1), [#allocation10], 4294955008 }
  0x43   : > { %1825 = dma.done.wait (%p47_p1), [#allocation13], 12288  }
  0x44   : > { %1827 = vsyncadd (%p47_p1), [#allocation13], 4294955008 }
  0x45   : > { %1829 = dma.done.wait (%p47_p1), [#allocation16], 512  }
  0x46   : > { %1831 = vsyncadd (%p47_p1), [#allocation16], 4294966784  ;;  %v432_v0 = vld [vmem:[#allocation9 + $0xf0] sm:$0xff]  ;;  %v433_v2 = vld [vmem:[#allocation9 + $0xf8] sm:$0xff]  ;;  %s1862_s9 = smov 64   ;;  %vm772_vm0 = vcmask 523264  }
  0x47   : > { %v464_v1 = vld [vmem:[#allocation9 + $0x1f0] sm:$0xff]  ;;  %466 = vmatpush.msra.mxu0 %v432_v0  ;;  %v465_v3 = vld [vmem:[#allocation9 + $0x1f8] sm:$0xff]  ;;  %v430_v4 = vld [vmem:[#allocation9 + $0xe0] sm:$0xff]  ;;  %512 = vmatpush.msra.mxu2 %v433_v2  ;;  %vm893_vm2 = vcmask 130048   ;;  %s397_s16 = scalar_lea.vmem [#allocation18], %s1408_s1  ;;  %s1426_s17 = sshll.u32 %s1929_s8, 5 }
  0x48   : > { %489 = vmatpush.msra.mxu1 %v464_v1  ;;  %v462_v5 = vld [vmem:[#allocation9 + $0x1e0] sm:$0xff]  ;;  %535 = vmatpush.msra.mxu3 %v465_v3  ;;  %v431_v6 = vld [vmem:[#allocation9 + $0xe8] sm:$0xff]  ;;  %v428_v8 = vld [vmem:[#allocation9 + $0xd0] sm:$0xff]  ;;  %s1261_s11 = scalar_lea.hbm %s2253_s7, %s1426_s17  ;;  %s1262_s10 = sshll.u32 %s397_s16, 4  ;;  %s1263_s10 = int_to_ptr.vmem [resolvable:$true] %s1262_s10 }
  0x49   : > { %v463_v7 = vld [vmem:[#allocation9 + $0x1e8] sm:$0xff]  ;;  %467 = vmatpush.msra.mxu0 %v430_v4  ;;  %v460_v9 = vld [vmem:[#allocation9 + $0x1d0] sm:$0xff]  ;;  %v429_v10 = vld [vmem:[#allocation9 + $0xd8] sm:$0xff]  ;;  %513 = vmatpush.msra.mxu2 %v431_v6  ;;  %s1264_s14 = sshll.u32 %s1261_s11, 4  ;;  %s1250_s13 = scalar_lea.sflag [#allocation8], %s2042_s20  ;;  %s1265_s14 = int_to_ptr.hbm [resolvable:$true] %s1264_s14 }
  0x4a   : > { %490 = vmatpush.msra.mxu1 %v462_v5  ;;  %v461_v11 = vld [vmem:[#allocation9 + $0x1d8] sm:$0xff]  ;;  %536 = vmatpush.msra.mxu3 %v463_v7  ;;  %v426_v12 = vld [vmem:[#allocation9 + $0xc0] sm:$0xff]  ;;  %v427_v14 = vld [vmem:[#allocation9 + $0xc8] sm:$0xff]  ;;  %s1786_s19 = sshra.s32 %s1265_s14, 4  ;;  %s1792_s1 = scalar_lea.hbm %s2253_s7, 64  ;;  %s1787_s19 = int_to_ptr.hbm [resolvable:$true] %s1786_s19 }
  0x4b   : > { %v458_v13 = vld [vmem:[#allocation9 + $0x1c0] sm:$0xff]  ;;  %468 = vmatpush.msra.mxu0 %v428_v8  ;;  %v459_v15 = vld [vmem:[#allocation9 + $0x1c8] sm:$0xff]  ;;  %514 = vmatpush.msra.mxu2 %v429_v10  ;;  %v424_v16 = vld [vmem:[#allocation9 + $0xb0] sm:$0xff]  ;;  %s1788_s8 = scalar_lea.hbm %s1787_s19, 32  ;;  %p1793_p12 = scmp.lt.s32.totalorder %s1787_s19, %s2253_s7 }
  0x4c   : > { %491 = vmatpush.msra.mxu1 %v460_v9  ;;  %537 = vmatpush.msra.mxu3 %v461_v11  ;;  %v456_v17 = vld [vmem:[#allocation9 + $0x1b0] sm:$0xff]  ;;  %v425_v18 = vld [vmem:[#allocation9 + $0xb8] sm:$0xff]  ;;  %v422_v20 = vld [vmem:[#allocation9 + $0xa0] sm:$0xff]  ;;  %p1789_p1 = scmp.ne.s32.totalorder %s1787_s19, %s1788_s8  ;;  %p1794_p7 = scmp.lt.s32.totalorder %s1792_s1, %s1788_s8 }
  0x4d   : > { %469 = vmatpush.msra.mxu0 %v426_v12  ;;  %v457_v19 = vld [vmem:[#allocation9 + $0x1b8] sm:$0xff]  ;;  %515 = vmatpush.msra.mxu2 %v427_v14  ;;  %v454_v21 = vld [vmem:[#allocation9 + $0x1a0] sm:$0xff]  ;;  %v423_v22 = vld [vmem:[#allocation9 + $0xa8] sm:$0xff] }
  0x4e   : > { %492 = vmatpush.msra.mxu1 %v458_v13  ;;  %538 = vmatpush.msra.mxu3 %v459_v15  ;;  %v455_v23 = vld [vmem:[#allocation9 + $0x1a8] sm:$0xff]  ;;  %v420_v24 = vld [vmem:[#allocation9 + $0x90] sm:$0xff]  ;;  %v421_v26 = vld [vmem:[#allocation9 + $0x98] sm:$0xff]  ;;  %p1790_p3 = pnand %p1789_p1, %p2008_p4  ;;  %p1795_p8 = por %p1794_p7, %p1793_p12 }
  0x4f   : > { %470 = vmatpush.msra.mxu0 %v424_v16  ;;  %516 = vmatpush.msra.mxu2 %v425_v18  ;;  %v452_v25 = vld [vmem:[#allocation9 + $0x190] sm:$0xff]  ;;  %v453_v27 = vld [vmem:[#allocation9 + $0x198] sm:$0xff]  ;;  %v418_v28 = vld [vmem:[#allocation9 + $0x80] sm:$0xff] }
  0x50   : > { %493 = vmatpush.msra.mxu1 %v456_v17  ;;  %539 = vmatpush.msra.mxu3 %v457_v19  ;;  %v450_v29 = vld [vmem:[#allocation9 + $0x180] sm:$0xff]  ;;  %v419_v30 = vld [vmem:[#allocation9 + $0x88] sm:$0xff]  ;;  %v416_v32 = vld [vmem:[#allocation9 + $0x70] sm:$0xff]  ;;  %p1791_p5 = pneg %p1790_p3 }
  0x51   : > { %471 = vmatpush.msra.mxu0 %v422_v20  ;;  %517 = vmatpush.msra.mxu2 %v423_v22  ;;  %v451_v31 = vld [vmem:[#allocation9 + $0x188] sm:$0xff]  ;;  %v448_v33 = vld [vmem:[#allocation9 + $0x170] sm:$0xff]  ;;  %v417_v34 = vld [vmem:[#allocation9 + $0x78] sm:$0xff] }
  0x52   : > { %494 = vmatpush.msra.mxu1 %v454_v21  ;;  %540 = vmatpush.msra.mxu3 %v455_v23  ;;  %v449_v35 = vld [vmem:[#allocation9 + $0x178] sm:$0xff]  ;;  %v414_v36 = vld [vmem:[#allocation9 + $0x60] sm:$0xff]  ;;  %v415_v38 = vld [vmem:[#allocation9 + $0x68] sm:$0xff]  ;;  %p1796_p9 = pnand %p1795_p8, %p1791_p5 }
  0x53   : > { %472 = vmatpush.msra.mxu0 %v420_v24  ;;  %518 = vmatpush.msra.mxu2 %v421_v26  ;;  %v446_v37 = vld [vmem:[#allocation9 + $0x160] sm:$0xff]  ;;  %v447_v39 = vld [vmem:[#allocation9 + $0x168] sm:$0xff]  ;;  %v412_v40 = vld [vmem:[#allocation9 + $0x50] sm:$0xff] }
  0x54   : > { %495 = vmatpush.msra.mxu1 %v452_v25  ;;  %541 = vmatpush.msra.mxu3 %v453_v27  ;;  %v444_v41 = vld [vmem:[#allocation9 + $0x150] sm:$0xff]  ;;  %v413_v42 = vld [vmem:[#allocation9 + $0x58] sm:$0xff]  ;;  %v410_v44 = vld [vmem:[#allocation9 + $0x40] sm:$0xff] }
  0x55   : > { %473 = vmatpush.msra.mxu0 %v418_v28  ;;  %519 = vmatpush.msra.mxu2 %v419_v30  ;;  %v445_v43 = vld [vmem:[#allocation9 + $0x158] sm:$0xff]  ;;  %v442_v45 = vld [vmem:[#allocation9 + $0x140] sm:$0xff]  ;;  %v411_v46 = vld [vmem:[#allocation9 + $0x48] sm:$0xff] }
  0x56   : > { %496 = vmatpush.msra.mxu1 %v450_v29  ;;  %542 = vmatpush.msra.mxu3 %v451_v31  ;;  %v443_v47 = vld [vmem:[#allocation9 + $0x148] sm:$0xff]  ;;  %v408_v48 = vld [vmem:[#allocation9 + $0x30] sm:$0xff]  ;;  %v409_v50 = vld [vmem:[#allocation9 + $0x38] sm:$0xff] }
  0x57   : > { %474 = vmatpush.msra.mxu0 %v416_v32  ;;  %520 = vmatpush.msra.mxu2 %v417_v34  ;;  %v440_v49 = vld [vmem:[#allocation9 + $0x130] sm:$0xff]  ;;  %v441_v51 = vld [vmem:[#allocation9 + $0x138] sm:$0xff]  ;;  %v406_v52 = vld [vmem:[#allocation9 + $0x20] sm:$0xff] }
  0x58   : > { %497 = vmatpush.msra.mxu1 %v448_v33  ;;  %543 = vmatpush.msra.mxu3 %v449_v35  ;;  %v438_v53 = vld [vmem:[#allocation9 + $0x120] sm:$0xff]  ;;  %v407_v54 = vld [vmem:[#allocation9 + $0x28] sm:$0xff]  ;;  %v404_v56 = vld [vmem:[#allocation9 + $0x10] sm:$0xff] }
  0x59   : > { %475 = vmatpush.msra.mxu0 %v414_v36  ;;  %521 = vmatpush.msra.mxu2 %v415_v38  ;;  %v439_v55 = vld [vmem:[#allocation9 + $0x128] sm:$0xff]  ;;  %v436_v57 = vld [vmem:[#allocation9 + $0x110] sm:$0xff]  ;;  %v405_v58 = vld [vmem:[#allocation9 + $0x18] sm:$0xff] }
  0x5a   : > { %498 = vmatpush.msra.mxu1 %v446_v37  ;;  %544 = vmatpush.msra.mxu3 %v447_v39  ;;  %v437_v59 = vld [vmem:[#allocation9 + $0x118] sm:$0xff]  ;;  %v402_v60 = vld [vmem:[#allocation9] sm:$0xff]  ;;  %v403_v62 = vld [vmem:[#allocation9 + $0x8] sm:$0xff] }
  0x5b   : > { %476 = vmatpush.msra.mxu0 %v412_v40  ;;  %522 = vmatpush.msra.mxu2 %v413_v42  ;;  %v434_v61 = vld [vmem:[#allocation9 + $0x100] sm:$0xff]  ;;  %v435_v63 = vld [vmem:[#allocation9 + $0x108] sm:$0xff]  ;;  %v573_v2 = vld [vmem:[#allocation11 + $0x78] sm:$0xff] }
  0x5c   : > { %499 = vmatpush.msra.mxu1 %v444_v41  ;;  %545 = vmatpush.msra.mxu3 %v445_v43  ;;  %v2067_v0 = vld [vmem:[%s2048_s22] sm:$0xff]  ;;  %v2070_v1 = vld [vmem:[%s2048_s22 + $0x8] sm:$0xff]  ;;  %v589_v3 = vld [vmem:[#allocation11 + $0xf8] sm:$0xff] }
  0x5d   : > { %477 = vmatpush.msra.mxu0 %v410_v44  ;;  %523 = vmatpush.msra.mxu2 %v411_v46  ;;  %v572_v4 = vld [vmem:[#allocation11 + $0x70] sm:$0xff]  ;;  %v2074_v6 = vld [vmem:[#allocation15 + $0x8] sm:$0xff]  ;;  %v2076_v7 = vld [vmem:[#allocation17 + $0x8] sm:$0xff] }
  0x5e   : > { %500 = vmatpush.msra.mxu1 %v442_v45  ;;  %546 = vmatpush.msra.mxu3 %v443_v47  ;;  %v588_v5 = vld [vmem:[#allocation11 + $0xf0] sm:$0xff]  ;;  %v571_v8 = vld [vmem:[#allocation11 + $0x68] sm:$0xff]  ;;  %v570_v10 = vld [vmem:[#allocation11 + $0x60] sm:$0xff] }
  0x5f   : > { %478 = vmatpush.msra.mxu0 %v408_v48  ;;  %524 = vmatpush.msra.mxu2 %v409_v50  ;;  %v587_v9 = vld [vmem:[#allocation11 + $0xe8] sm:$0xff]  ;;  %v586_v11 = vld [vmem:[#allocation11 + $0xe0] sm:$0xff]  ;;  %v569_v12 = vld [vmem:[#allocation11 + $0x58] sm:$0xff] }
  0x60   : > { %501 = vmatpush.msra.mxu1 %v440_v49  ;;  %547 = vmatpush.msra.mxu3 %v441_v51  ;;  %v585_v13 = vld [vmem:[#allocation11 + $0xd8] sm:$0xff]  ;;  %v2085_v14 = vld [vmem:[%s2048_s22 + $0x10] sm:$0xff]  ;;  %v2092_v18 = vld [vmem:[#allocation15] sm:$0xff] }
  0x61   : > { %479 = vmatpush.msra.mxu0 %v406_v52  ;;  %525 = vmatpush.msra.mxu2 %v407_v54  ;;  %v2088_v15 = vld [vmem:[%s2048_s22 + $0x18] sm:$0xff]  ;;  %v568_v16 = vld [vmem:[#allocation11 + $0x50] sm:$0xff]  ;;  %v567_v20 = vld [vmem:[#allocation11 + $0x48] sm:$0xff] }
  0x62   : > { %502 = vmatpush.msra.mxu1 %v438_v53  ;;  %548 = vmatpush.msra.mxu3 %v439_v55  ;;  %v584_v17 = vld [vmem:[#allocation11 + $0xd0] sm:$0xff]  ;;  %v583_v21 = vld [vmem:[#allocation11 + $0xc8] sm:$0xff]  ;;  %v566_v22 = vld [vmem:[#allocation11 + $0x40] sm:$0xff] }
  0x63   : > { %480 = vmatpush.msra.mxu0 %v404_v56  ;;  %526 = vmatpush.msra.mxu2 %v405_v58  ;;  %v2094_v19 = vld [vmem:[#allocation17] sm:$0xff]  ;;  %v582_v23 = vld [vmem:[#allocation11 + $0xc0] sm:$0xff]  ;;  %v565_v24 = vld [vmem:[#allocation11 + $0x38] sm:$0xff] }
  0x64   : > { %503 = vmatpush.msra.mxu1 %v436_v57  ;;  %549 = vmatpush.msra.mxu3 %v437_v59  ;;  %v581_v25 = vld [vmem:[#allocation11 + $0xb8] sm:$0xff]  ;;  %v564_v26 = vld [vmem:[#allocation11 + $0x30] sm:$0xff]  ;;  %v563_v28 = vld [vmem:[#allocation11 + $0x28] sm:$0xff] }
  0x65   : > { %481 = vmatpush.msra.mxu0 %v402_v60  ;;  %527 = vmatpush.msra.mxu2 %v403_v62  ;;  %v580_v27 = vld [vmem:[#allocation11 + $0xb0] sm:$0xff]  ;;  %v579_v29 = vld [vmem:[#allocation11 + $0xa8] sm:$0xff]  ;;  %v562_v30 = vld [vmem:[#allocation11 + $0x20] sm:$0xff] }
  0x66   : > { %504 = vmatpush.msra.mxu1 %v434_v61  ;;  %550 = vmatpush.msra.mxu3 %v435_v63  ;;  %v578_v31 = vld [vmem:[#allocation11 + $0xa0] sm:$0xff]  ;;  %v561_v32 = vld [vmem:[#allocation11 + $0x18] sm:$0xff]  ;;  %v560_v34 = vld [vmem:[#allocation11 + $0x10] sm:$0xff] }
  0x67   : > { %528 = vmatmul.f32.vlgmr.msra.gmra.mxu2 %v2067_v0  ;;  %551 = vmatmul.f32.vlgmr.msra.gmra.mxu3 %v2070_v1  ;;  %v577_v33 = vld [vmem:[#allocation11 + $0x98] sm:$0xff]  ;;  %v576_v35 = vld [vmem:[#allocation11 + $0x90] sm:$0xff]  ;;  %v559_v36 = vld [vmem:[#allocation11 + $0x8] sm:$0xff] }
  0x68   : > { %590 = vmatpush.msrb.mxu0 %v573_v2  ;;  %613 = vmatpush.msrb.mxu1 %v589_v3  ;;  %v575_v37 = vld [vmem:[#allocation11 + $0x88] sm:$0xff]  ;;  %v558_v38 = vld [vmem:[#allocation11] sm:$0xff] }
  0x69   : > { %482 = vmatmul.f32.vlgmr.msra.gmra.mxu0 %v2067_v0  ;;  %505 = vmatmul.f32.vlgmr.msra.gmra.mxu1 %v2070_v1  ;;  %v574_v39 = vld [vmem:[#allocation11 + $0x80] sm:$0xff] }
  0x6a   : > { %591 = vmatpush.msrb.mxu0 %v572_v4  ;;  %614 = vmatpush.msrb.mxu1 %v588_v5 }
  0x6b   : > { %748 = vrot.lane.b32.xlu0 %v2074_v6, %s1862_s9  ;;  %726 = vrot.lane.b32.xlu1 %v2076_v7, %s1862_s9 }
  0x6c   : > { %592 = vmatpush.msrb.mxu0 %v571_v8  ;;  %615 = vmatpush.msrb.mxu1 %v587_v9 }
  0x6d   : > { %724 = vrot.lane.b32.xlu2 %v2094_v19, %s1862_s9 }
  0x6e   : > { %593 = vmatpush.msrb.mxu0 %v570_v10  ;;  %616 = vmatpush.msrb.mxu1 %v586_v11 }
  0x6f   : > { %531 = vmatmul.f32.gmra.mxu2 %v2085_v14  ;;  %554 = vmatmul.f32.gmra.mxu3 %v2088_v15 }
  0x70   : > { %594 = vmatpush.msrb.mxu0 %v569_v12  ;;  %617 = vmatpush.msrb.mxu1 %v585_v13 }
  0x71   : > { %485 = vmatmul.f32.gmra.mxu0 %v2085_v14  ;;  %508 = vmatmul.f32.gmra.mxu1 %v2088_v15 }
  0x72   : > { %595 = vmatpush.msrb.mxu0 %v568_v16  ;;  %618 = vmatpush.msrb.mxu1 %v584_v17 }
  0x73   : > { %746 = vrot.lane.b32.xlu0 %v2092_v18, %s1862_s9 }
  0x74   : > { %596 = vmatpush.msrb.mxu0 %v567_v20  ;;  %619 = vmatpush.msrb.mxu1 %v583_v21  ;;  %v651_v20 = vld [vmem:[#allocation12 + $0x78] sm:$0xff]  ;;  %v650_v21 = vld [vmem:[#allocation12 + $0x70] sm:$0xff] }
  0x75   : > { %668 = vmatpush.msrb.mxu2 %v651_v20 }
  0x76   : > { %597 = vmatpush.msrb.mxu0 %v566_v22  ;;  %620 = vmatpush.msrb.mxu1 %v582_v23  ;;  %v667_v22 = vld [vmem:[#allocation12 + $0xf8] sm:$0xff]  ;;  %v666_v23 = vld [vmem:[#allocation12 + $0xf0] sm:$0xff] }
  0x77   : > { %691 = vmatpush.msrb.mxu3 %v667_v22  ;;  %669 = vmatpush.msrb.mxu2 %v650_v21 }
  0x78   : > { %598 = vmatpush.msrb.mxu0 %v565_v24  ;;  %621 = vmatpush.msrb.mxu1 %v581_v25 }
  0x79   : > { %692 = vmatpush.msrb.mxu3 %v666_v23 }
  0x7a   : > { %599 = vmatpush.msrb.mxu0 %v564_v26  ;;  %622 = vmatpush.msrb.mxu1 %v580_v27  ;;  %v649_v26 = vld [vmem:[#allocation12 + $0x68] sm:$0xff] }
  0x7b   : > { %v665_v27 = vld [vmem:[#allocation12 + $0xe8] sm:$0xff]  ;;  %670 = vmatpush.msrb.mxu2 %v649_v26 }
  0x7c   : > { %600 = vmatpush.msrb.mxu0 %v563_v28  ;;  %623 = vmatpush.msrb.mxu1 %v579_v29 }
  0x7d   : > { %693 = vmatpush.msrb.mxu3 %v665_v27 }
  0x7e   : > { %601 = vmatpush.msrb.mxu0 %v562_v30  ;;  %624 = vmatpush.msrb.mxu1 %v578_v31  ;;  %v648_v31 = vld [vmem:[#allocation12 + $0x60] sm:$0xff] }
  0x7f   : > { %671 = vmatpush.msrb.mxu2 %v648_v31 }
  0x80   : > { %602 = vmatpush.msrb.mxu0 %v561_v32  ;;  %625 = vmatpush.msrb.mxu1 %v577_v33  ;;  %v664_v32 = vld [vmem:[#allocation12 + $0xe0] sm:$0xff] }
  0x81   : > { %694 = vmatpush.msrb.mxu3 %v664_v32 }
  0x82   : > { %603 = vmatpush.msrb.mxu0 %v560_v34  ;;  %626 = vmatpush.msrb.mxu1 %v576_v35  ;;  %v647_v34 = vld [vmem:[#allocation12 + $0x58] sm:$0xff] }
  0x83   : > { %v663_v35 = vld [vmem:[#allocation12 + $0xd8] sm:$0xff]  ;;  %672 = vmatpush.msrb.mxu2 %v647_v34 }
  0x84   : > { %604 = vmatpush.msrb.mxu0 %v559_v36  ;;  %627 = vmatpush.msrb.mxu1 %v575_v37  ;;  %v646_v36 = vld [vmem:[#allocation12 + $0x50] sm:$0xff] }
  0x85   : > { %v662_v37 = vld [vmem:[#allocation12 + $0xd0] sm:$0xff]  ;;  %695 = vmatpush.msrb.mxu3 %v663_v35  ;;  %673 = vmatpush.msrb.mxu2 %v646_v36 }
  0x86   : > { %605 = vmatpush.msrb.mxu0 %v558_v38  ;;  %628 = vmatpush.msrb.mxu1 %v574_v39  ;;  %v645_v39 = vld [vmem:[#allocation12 + $0x48] sm:$0xff] }
  0x87   : > { %606 = vmatmul.f32.vlgmr.msrb.gmra.mxu0 %v2067_v0  ;;  %629 = vmatmul.f32.vlgmr.msrb.gmra.mxu1 %v2070_v1 }
  0x88   : > { %696 = vmatpush.msrb.mxu3 %v662_v37  ;;  %674 = vmatpush.msrb.mxu2 %v645_v39 }
  0x8f   : > { %609 = vmatmul.f32.gmra.mxu0 %v2085_v14  ;;  %632 = vmatmul.f32.gmra.mxu1 %v2088_v15 }
  0xc7   : > { %v2116_v55 = vpop.permute.xlu2 %724 }
  0xdd   : > { %v749_v40 = vpop.permute.xlu0 %748  ;;  %v2127_v2 = vpop.permute.xlu1 %726 }
  0xe5   : > { %v747_v43 = vpop.permute.xlu0 %746 }
  0xe6   : > { %v483_v41 = vpop.f32.mrf.mxu0  ;;  %v506_v42 = vpop.f32.mrf.mxu1 }
  0xe7   : > { %v2125_v61 = vadd.f32 %v506_v42, %v483_v41 }
  0xe9   : > { %v752_v5 = vmul.f32 %v747_v43, %v2125_v61  ;;  %v742_v13 = vmul.f32 %v2094_v19, %v2125_v61 }
  0xea   : > { %v529_v44 = vpop.f32.mrf.mxu2  ;;  %v552_v45 = vpop.f32.mrf.mxu3 }
  0xeb   : > { %v2106_v46 = vadd.f32 %v552_v45, %v529_v44  ;;  %v644_v45 = vld [vmem:[#allocation12 + $0x40] sm:$0xff] }
  0xec   : > { %675 = vmatpush.msrb.mxu2 %v644_v45 }
  0xed   : > { %v793_v47 = vmul.f32 %v747_v43, %v2106_v46  ;;  %v779_v11 = vmul.f32 %v2116_v55, %v2106_v46 }
  0xee   : > { %v486_v48 = vpop.f32.mrf.mxu0  ;;  %v509_v49 = vpop.f32.mrf.mxu1 }
  0xef   : > { %797 = vrot.lane.b32.xlu0 %v793_v47, %s1862_s9  ;;  %v2110_v50 = vadd.f32 %v509_v49, %v486_v48  ;;  %v660_v47 = vld [vmem:[#allocation12 + $0xc0] sm:$0xff]  ;;  %v643_v49 = vld [vmem:[#allocation12 + $0x38] sm:$0xff] }
  0xf0   : > { %676 = vmatpush.msrb.mxu2 %v643_v49 }
  0xf1   : > { %v753_v51 = vmul.f32 %v749_v40, %v2110_v50  ;;  %v721_v36 = vmul.f32 %v2074_v6, %v2110_v50 }
  0xf2   : > { %v532_v58 = vpop.f32.mrf.mxu2  ;;  %v555_v59 = vpop.f32.mrf.mxu3 }
  0xf3   : > { %v2123_v60 = vadd.f32 %v555_v59, %v532_v58  ;;  %v640_v58 = vld [vmem:[#allocation12 + $0x20] sm:$0xff] }
  0xf4   : > { %v656_v59 = vld [vmem:[#allocation12 + $0xa0] sm:$0xff] }
  0xf5   : > { %v780_v4 = vmul.f32 %v2127_v2, %v2123_v60  ;;  %v794_v9 = vmul.f32 %v749_v40, %v2123_v60  ;;  %v792_v38 = vmul.f32 %v2076_v7, %v2123_v60 }
  0xf7   : > { %758 = vrot.lane.b32.xlu0 %v753_v51, %s1862_s9  ;;  %v659_v51 = vld [vmem:[#allocation12 + $0xb8] sm:$0xff] }
 0x104   : > { %v607_v52 = vpop.f32.mrf.mxu0  ;;  %v630_v53 = vpop.f32.mrf.mxu1 }
 0x105   : > { %v2114_v54 = vadd.f32 %v630_v53, %v607_v52  ;;  %v642_v52 = vld [vmem:[#allocation12 + $0x30] sm:$0xff] }
 0x106   : > { %v658_v53 = vld [vmem:[#allocation12 + $0xb0] sm:$0xff]  ;;  %677 = vmatpush.msrb.mxu2 %v642_v52 }
 0x107   : > { %v833_v56 = vmul.f32 %v747_v43, %v2114_v54  ;;  %v819_v57 = vmul.f32 %v2116_v55, %v2114_v54  ;;  %v831_v24 = vmul.f32 %v2094_v19, %v2114_v54  ;;  %v791_v43 = vmul.f32 %v2094_v19, %v2106_v46  ;;  %v657_v19 = vld [vmem:[#allocation12 + $0xa8] sm:$0xff] }
 0x108   : > { %v817_v23 = vmul.f32 %v2092_v18, %v2114_v54  ;;  %v720_v54 = vmul.f32 %v2092_v18, %v2125_v61 }
 0x109   : > { %837 = vrot.lane.b32.xlu2 %v833_v56, %s1862_s9  ;;  %823 = vrot.lane.b32.xlu0 %v819_v57, %s1862_s9  ;;  %v641_v56 = vld [vmem:[#allocation12 + $0x28] sm:$0xff]  ;;  %v731_v57 = vmul.f32 %v2127_v2, %v2110_v50 }
 0x10a   : > { %678 = vmatpush.msrb.mxu2 %v641_v56 }
 0x10c   : > { %v610_v62 = vpop.f32.mrf.mxu0  ;;  %v633_v63 = vpop.f32.mrf.mxu1  ;;  %679 = vmatpush.msrb.mxu2 %v640_v58 }
 0x10d   : > { %v2129_v3 = vadd.f32 %v633_v63, %v610_v62  ;;  %v730_v62 = vmul.f32 %v2116_v55, %v2125_v61  ;;  %v639_v63 = vld [vmem:[#allocation12 + $0x18] sm:$0xff]  ;;  %v743_v55 = vmul.f32 %v2076_v7, %v2110_v50 }
 0x10e   : > { %680 = vmatpush.msrb.mxu2 %v639_v63 }
 0x10f   : > { %v834_v8 = vmul.f32 %v749_v40, %v2129_v3  ;;  %v820_v10 = vmul.f32 %v2127_v2, %v2129_v3  ;;  %v832_v25 = vmul.f32 %v2076_v7, %v2129_v3  ;;  %v661_v40 = vld [vmem:[#allocation12 + $0xc8] sm:$0xff]  ;;  %v818_v7 = vmul.f32 %v2074_v6, %v2129_v3 }
 0x110   : > { %697 = vmatpush.msrb.mxu3 %v661_v40  ;;  %v637_v2 = vld [vmem:[#allocation12 + $0x8] sm:$0xff] }
 0x111   : > { %756 = vrot.lane.b32.xlu2 %v752_v5, %s1862_s9  ;;  %839 = vrot.lane.b32.xlu1 %v834_v8, %s1862_s9  ;;  %v638_v5 = vld [vmem:[#allocation12 + $0x10] sm:$0xff] }
 0x112   : > { %785 = vrot.lane.b32.xlu0 %v780_v4, %s1862_s9  ;;  %698 = vmatpush.msrb.mxu3 %v660_v47  ;;  %v655_v4 = vld [vmem:[#allocation12 + $0x98] sm:$0xff]  ;;  %v654_v8 = vld [vmem:[#allocation12 + $0x90] sm:$0xff] }
 0x113   : > { %681 = vmatpush.msrb.mxu2 %v638_v5 }
 0x114   : > { %699 = vmatpush.msrb.mxu3 %v659_v51 }
 0x115   : > { %682 = vmatpush.msrb.mxu2 %v637_v2 }
 0x116   : > { %700 = vmatpush.msrb.mxu3 %v658_v53 }
 0x118   : > { %701 = vmatpush.msrb.mxu3 %v657_v19 }
 0x119   : > { %799 = vrot.lane.b32.xlu1 %v794_v9, %s1862_s9  ;;  %v653_v9 = vld [vmem:[#allocation12 + $0x88] sm:$0xff] }
 0x11a   : > { %702 = vmatpush.msrb.mxu3 %v656_v59 }
 0x11c   : > { %703 = vmatpush.msrb.mxu3 %v655_v4 }
 0x11e   : > { %704 = vmatpush.msrb.mxu3 %v654_v8 }
 0x120   : > { %705 = vmatpush.msrb.mxu3 %v653_v9 }
 0x121   : > { %825 = vrot.lane.b32.xlu1 %v820_v10, %s1862_s9 }
 0x129   : > { %783 = vrot.lane.b32.xlu1 %v779_v11, %s1862_s9  ;;  %v636_v11 = vld [vmem:[#allocation12] sm:$0xff] }
 0x12a   : > { %683 = vmatpush.msrb.mxu2 %v636_v11  ;;  %v1149_v11 = vld [vmem:[#allocation14 + $0x1e0] sm:$0xff] }
 0x12b   : > { %684 = vmatmul.f32.vlgmr.msrb.gmra.mxu2 %v2067_v0 }
 0x133   : > { %687 = vmatmul.f32.gmra.mxu2 %v2085_v14 }
 0x161   : > { %v798_v41 = vpop.permute.xlu0 %797 }
 0x162   : > { %v803_v48 = vadd.f32 %v798_v41, %v791_v43 }
 0x163   : > { %v838_v12 = vpop.permute.xlu2 %837 }
 0x164   : > { %v843_v29 = vadd.f32 %v838_v12, %v831_v24  ;;  %v652_v12 = vld [vmem:[#allocation12 + $0x80] sm:$0xff] }
 0x165   : > { %706 = vmatpush.msrb.mxu3 %v652_v12 }
 0x166   : > { %707 = vmatmul.f32.vlgmr.msrb.gmra.mxu3 %v2070_v1 }
 0x169   : > { %v759_v10 = vpop.permute.xlu0 %758 }
 0x16b   : > { %v757_v16 = vpop.permute.xlu2 %756 }
 0x16c   : > { %v762_v17 = vadd.f32 %v757_v16, %v742_v13  ;;  %v763_v13 = vadd.f32 %v759_v10, %v743_v55  ;;  %v1151_v10 = vld [vmem:[#allocation14 + $0x1f0] sm:$0xff]  ;;  %v1152_v55 = vld [vmem:[#allocation14 + $0x1f8] sm:$0xff] }
 0x16e   : > { %766 = vrot.lane.b32.xlu0 %v762_v17, %s1862_s9  ;;  %710 = vmatmul.f32.gmra.mxu3 %v2088_v15  ;;  %v777_v15 = vmul.f32 %v2092_v18, %v2106_v46  ;;  %v778_v46 = vmul.f32 %v2074_v6, %v2123_v60 }
 0x17b   : > { %v824_v17 = vpop.permute.xlu0 %823 }
 0x17c   : > { %v829_v14 = vsub.f32 %v817_v23, %v824_v17  ;;  %v1148_v23 = vld [vmem:[#allocation14 + $0x1d8] sm:$0xff] }
 0x183   : > { %v840_v28 = vpop.permute.xlu1 %839 }
 0x184   : > { %v844_v30 = vadd.f32 %v840_v28, %v832_v25  ;;  %v786_v28 = vpop.permute.xlu0 %785 }
 0x186   : > { %v1541_v33 = vpack.i.bf16 %v843_v29, %v844_v30 }
 0x188   : > { %1542 = vrot.lane.b32.xlu2 %v1541_v33, %s1862_s9  ;;  %v790_v33 = vsub.f32 %v778_v46, %v786_v28  ;;  %v1114_v28 = vld [vmem:[#allocation14 + $0xc8] sm:$0xff] }
 0x18b   : > { %v800_v42 = vpop.permute.xlu1 %799 }
 0x18c   : > { %v804_v44 = vadd.f32 %v800_v42, %v792_v38 }
 0x18e   : > { %809 = vrot.lane.b32.xlu1 %v804_v44, %s1862_s9  ;;  %v857_v44 = vlaneseq }
 0x190   : > { %807 = vrot.lane.b32.xlu2 %v803_v48, %s1862_s9  ;;  %v858_v45 = vshrl.u32 %v857_v44, 7  ;;  %v861_v47 = vand.u32 127, %v857_v44  ;;  %v1107_v44 = vld [vmem:[#allocation14 + $0x90] sm:$0xff] }
 0x192   : > { %vm862_vm1 = vcmp.le.s32.totalorder %v861_v47, %v858_v45  ;;  %v859_v53 = vadd.s32 8, %v858_v45  ;;  %v1108_v45 = vld [vmem:[#allocation14 + $0x98] sm:$0xff] }
 0x193   : > { %v826_v16 = vpop.permute.xlu1 %825 }
 0x194   : > { %v830_v21 = vsub.f32 %v818_v7, %v826_v16  ;;  %vm863_vm3 = vcmp.le.s32.totalorder %v861_v47, %v859_v53  ;;  %v1119_v16 = vld [vmem:[#allocation14 + $0xf0] sm:$0xff]  ;;  %v1120_v7 = vld [vmem:[#allocation14 + $0xf8] sm:$0xff] }
 0x195   : > { %v1135_v47 = vld [vmem:[#allocation14 + $0x170] sm:$0xff]  ;;  %v1104_v53 = vld [vmem:[#allocation14 + $0x78] sm:$0xff] }
 0x196   : > { %736 = vrot.lane.b32.xlu1 %v731_v57, %s1862_s9 }
 0x198   : > { %734 = vrot.lane.b32.xlu2 %v730_v62, %s1862_s9 }
 0x19b   : > { %v784_v1 = vpop.permute.xlu1 %783 }
 0x19c   : > { %v789_v25 = vsub.f32 %v777_v15, %v784_v1  ;;  %v1145_v1 = vld [vmem:[#allocation14 + $0x1c0] sm:$0xff]  ;;  %v1146_v15 = vld [vmem:[#allocation14 + $0x1c8] sm:$0xff] }
 0x1a0   : > { %768 = vrot.lane.b32.xlu2 %v763_v13, %s1862_s9  ;;  %v1150_v13 = vld [vmem:[#allocation14 + $0x1e8] sm:$0xff] }
 0x1ae   : > { %v685_v39 = vpop.f32.mrf.mxu2 }
 0x1b6   : > { %v688_v41 = vpop.f32.mrf.mxu2 }
 0x1e0   : > { %v767_v31 = vpop.permute.xlu0 %766 }
 0x1e2   : > { %v1543_v20 = vpop.permute.xlu2 %1542 }
 0x1e3   : > { %v1544_v22 = vunpack.i.l.bf16 %v1543_v20  ;;  %v1545_v24 = vunpack.i.h.bf16 %v1543_v20  ;;  %v1117_v20 = vld [vmem:[#allocation14 + $0xe0] sm:$0xff] }
 0x1e5   : > { %v854_v0 = vsel %vm772_vm0, %v830_v21, %v1544_v22  ;;  %v853_v3 = vsel %vm772_vm0, %v829_v14, %v1545_v24  ;;  %v1147_v21 = vld [vmem:[#allocation14 + $0x1d0] sm:$0xff]  ;;  %v1118_v24 = vld [vmem:[#allocation14 + $0xe8] sm:$0xff] }
 0x1e6   : > { %882 = vmatpush.xpose.msra.mxu0 %v854_v0  ;;  %993 = vmatpush.xpose.msra.mxu2 %v854_v0  ;;  %v1115_v14 = vld [vmem:[#allocation14 + $0xd0] sm:$0xff] }
 0x1e9   : > { %v708_v40 = vpop.f32.mrf.mxu3 }
 0x1ea   : > { %v808_v26 = vpop.permute.xlu2 %807  ;;  %883 = vmatpush.xpose.msra.mxu0 %v853_v3  ;;  %994 = vmatpush.xpose.msra.mxu2 %v853_v3  ;;  %v709_v43 = vadd.f32 %v708_v40, %v685_v39  ;;  %v1143_v3 = vld [vmem:[#allocation14 + $0x1b0] sm:$0xff]  ;;  %v1140_v40 = vld [vmem:[#allocation14 + $0x198] sm:$0xff] }
 0x1eb   : > { %v813_v27 = vsel %vm772_vm0, %v789_v25, %v808_v26  ;;  %v1116_v25 = vld [vmem:[#allocation14 + $0xd8] sm:$0xff]  ;;  %v1113_v26 = vld [vmem:[#allocation14 + $0xc0] sm:$0xff]  ;;  %v1139_v39 = vld [vmem:[#allocation14 + $0x190] sm:$0xff] }
 0x1ed   : > { %995 = vmatmul.f32.vlgmr.msra.gmra.mxu2 %v813_v27  ;;  %v1144_v27 = vld [vmem:[#allocation14 + $0x1b8] sm:$0xff] }
 0x1ee   : > { %1153 = vmatpush.msrb.mxu0 %v1119_v16  ;;  %1199 = vmatpush.msrb.mxu2 %v1120_v7  ;;  %v1124_v16 = vld [vmem:[#allocation14 + $0x118] sm:$0xff]  ;;  %v1093_v7 = vld [vmem:[#allocation14 + $0x20] sm:$0xff] }
 0x1f0   : > { %1154 = vmatpush.msrb.mxu0 %v1117_v20  ;;  %1200 = vmatpush.msrb.mxu2 %v1118_v24  ;;  %v1121_v20 = vld [vmem:[#allocation14 + $0x100] sm:$0xff] }
 0x1f1   : > { %v711_v42 = vpop.f32.mrf.mxu3  ;;  %v1089_v24 = vld [vmem:[#allocation14] sm:$0xff] }
 0x1f2   : > { %v735_v29 = vpop.permute.xlu2 %734  ;;  %v712_v60 = vadd.f32 %v711_v42, %v688_v41  ;;  %1155 = vmatpush.msrb.mxu0 %v1115_v14  ;;  %1201 = vmatpush.msrb.mxu2 %v1116_v25  ;;  %v1109_v41 = vld [vmem:[#allocation14 + $0xa0] sm:$0xff]  ;;  %v1110_v42 = vld [vmem:[#allocation14 + $0xa8] sm:$0xff] }
 0x1f3   : > { %v740_v30 = vsub.f32 %v720_v54, %v735_v29  ;;  %v1141_v54 = vld [vmem:[#allocation14 + $0x1a0] sm:$0xff]  ;;  %v1111_v29 = vld [vmem:[#allocation14 + $0xb0] sm:$0xff] }
 0x1f4   : > { %934 = vmatpush.msra.mxu1 %v712_v60  ;;  %1044 = vmatpush.msra.mxu3 %v712_v60  ;;  %v1138_v60 = vld [vmem:[#allocation14 + $0x188] sm:$0xff] }
 0x1f5   : > { %v773_v32 = vsel %vm772_vm0, %v740_v30, %v767_v31  ;;  %1156 = vmatpush.msrb.mxu0 %v1113_v26  ;;  %v1142_v30 = vld [vmem:[#allocation14 + $0x1a8] sm:$0xff]  ;;  %v1112_v31 = vld [vmem:[#allocation14 + $0xb8] sm:$0xff]  ;;  %1202 = vmatpush.msrb.mxu2 %v1114_v28 }
 0x1f6   : > { %884 = vmatmul.f32.vlgmr.msra.gmra.mxu0 %v773_v32  ;;  %935 = vmatpush.msra.mxu1 %v709_v43 }
 0x1f7   : > { %1045 = vmatpush.msra.mxu3 %v709_v43  ;;  %1157 = vmatpush.msrb.mxu0 %v1111_v29  ;;  %v1137_v43 = vld [vmem:[#allocation14 + $0x180] sm:$0xff] }
 0x1f8   : > { %1176 = vmatpush.msrb.mxu1 %v1151_v10  ;;  %1203 = vmatpush.msrb.mxu2 %v1112_v31  ;;  %v1125_v10 = vld [vmem:[#allocation14 + $0x120] sm:$0xff] }
 0x1f9   : > { %1222 = vmatpush.msrb.mxu3 %v1152_v55  ;;  %1158 = vmatpush.msrb.mxu0 %v1109_v41  ;;  %v1126_v55 = vld [vmem:[#allocation14 + $0x128] sm:$0xff] }
 0x1fa   : > { %v769_v18 = vpop.permute.xlu2 %768  ;;  %1177 = vmatpush.msrb.mxu1 %v1149_v11  ;;  %1204 = vmatpush.msrb.mxu2 %v1110_v42  ;;  %v1095_v11 = vld [vmem:[#allocation14 + $0x30] sm:$0xff] }
 0x1fb   : > { %1223 = vmatpush.msrb.mxu3 %v1150_v13  ;;  %1159 = vmatpush.msrb.mxu0 %v1107_v44  ;;  %v1123_v13 = vld [vmem:[#allocation14 + $0x110] sm:$0xff] }
 0x1fc   : > { %1178 = vmatpush.msrb.mxu1 %v1147_v21  ;;  %1205 = vmatpush.msrb.mxu2 %v1108_v45  ;;  %v1122_v21 = vld [vmem:[#allocation14 + $0x108] sm:$0xff] }
 0x1fd   : > { %1224 = vmatpush.msrb.mxu3 %v1148_v23  ;;  %v1092_v23 = vld [vmem:[#allocation14 + $0x18] sm:$0xff] }
 0x1fe   : > { %1179 = vmatpush.msrb.mxu1 %v1145_v1 }
 0x1ff   : > { %1225 = vmatpush.msrb.mxu3 %v1146_v15 }
 0x200   : > { %v810_v34 = vpop.permute.xlu1 %809  ;;  %1180 = vmatpush.msrb.mxu1 %v1143_v3 }
 0x201   : > { %v814_v35 = vsel %vm772_vm0, %v790_v33, %v810_v34  ;;  %1226 = vmatpush.msrb.mxu3 %v1144_v27 }
 0x202   : > { %998 = vmatmul.f32.gmra.mxu2 %v814_v35  ;;  %1181 = vmatpush.msrb.mxu1 %v1141_v54 }
 0x203   : > { %1227 = vmatpush.msrb.mxu3 %v1142_v30 }
 0x204   : > { %1182 = vmatpush.msrb.mxu1 %v1139_v39 }
 0x205   : > { %1228 = vmatpush.msrb.mxu3 %v1140_v40 }
 0x206   : > { %1183 = vmatpush.msrb.mxu1 %v1137_v43 }
 0x207   : > { %1229 = vmatpush.msrb.mxu3 %v1138_v60 }
 0x208   : > { %v737_v37 = vpop.permute.xlu1 %736  ;;  %1184 = vmatpush.msrb.mxu1 %v1135_v47 }
 0x209   : > { %v741_v38 = vsub.f32 %v721_v36, %v737_v37 }
 0x20b   : > { %v774_v61 = vsel %vm772_vm0, %v741_v38, %v769_v18 }
 0x20c   : > { %887 = vmatmul.f32.gmra.mxu0 %v774_v61 }
 0x270   : > { %v996_v6 = vpop.f32.mrf.mxu2 }
 0x271   : > { %v1002_v50 = vsel %vm862_vm1, %v996_v6, -1e+30  ;;  %v1136_v6 = vld [vmem:[#allocation14 + $0x178] sm:$0xff] }
 0x272   : > { %v1004_v48 = vsel %vm893_vm2, %v1002_v50, -inf  ;;  %1230 = vmatpush.msrb.mxu3 %v1136_v6 }
 0x273   : > { %1005 = vmax.xlane.f32.xlu0 %v1004_v48  ;;  %v885_v49 = vpop.f32.mrf.mxu0  ;;  %v1106_v48 = vld [vmem:[#allocation14 + $0x88] sm:$0xff] }
 0x274   : > { %v891_v51 = vsel %vm862_vm1, %v885_v49, -1e+30  ;;  %1206 = vmatpush.msrb.mxu2 %v1106_v48  ;;  %v1133_v49 = vld [vmem:[#allocation14 + $0x160] sm:$0xff] }
 0x275   : > { %v894_v52 = vsel %vm893_vm2, %v891_v51, -inf  ;;  %1185 = vmatpush.msrb.mxu1 %v1133_v49 }
 0x276   : > { %895 = vmax.xlane.f32.xlu1 %v894_v52  ;;  %v1103_v52 = vld [vmem:[#allocation14 + $0x70] sm:$0xff]  ;;  %1207 = vmatpush.msrb.mxu2 %v1104_v53 }
 0x285   : > { %v999_v56 = vpop.f32.mrf.mxu2 }
 0x286   : > { %v2193_v19 = vsel %vm863_vm3, %v999_v56, -1e+30  ;;  %v1131_v56 = vld [vmem:[#allocation14 + $0x150] sm:$0xff] }
 0x287   : > { %v1007_v57 = vsel %vm893_vm2, %v2193_v19, -inf  ;;  %1186 = vmatpush.msrb.mxu1 %v1131_v56 }
 0x288   : > { %1008 = vmax.xlane.f32.xlu2 %v1007_v57  ;;  %v1101_v57 = vld [vmem:[#allocation14 + $0x60] sm:$0xff] }
 0x289   : > { %v888_v58 = vpop.f32.mrf.mxu0 }
 0x28a   : > { %v2197_v59 = vsel %vm863_vm3, %v888_v58, -1e+30  ;;  %v1102_v58 = vld [vmem:[#allocation14 + $0x68] sm:$0xff] }
 0x28b   : > { %v897_v62 = vsel %vm893_vm2, %v2197_v59, -inf  ;;  %1208 = vmatpush.msrb.mxu2 %v1102_v58 }
 0x290   : > { %898 = vmax.xlane.f32.xlu2 %v897_v62  ;;  %v1130_v62 = vld [vmem:[#allocation14 + $0x148] sm:$0xff] }
 0x2e6   : > { %v1006_v63 = vpop.xlane.xlu0 %1005 }
 0x2e7   : > { %v1010_v4 = vsub.f32 %v1002_v50, %v1006_v63  ;;  %v1105_v50 = vld [vmem:[#allocation14 + $0x80] sm:$0xff]  ;;  %v1099_v63 = vld [vmem:[#allocation14 + $0x50] sm:$0xff] }
 0x2e8   : > { %1160 = vmatpush.msrb.mxu0 %v1105_v50 }
 0x2e9   : > { %v1012_v5 = vmul.f32 1.442695, %v1010_v4  ;;  %v896_v8 = vpop.xlane.xlu1 %895  ;;  %v1100_v4 = vld [vmem:[#allocation14 + $0x58] sm:$0xff] }
 0x2ea   : > { %v900_v2 = vsub.f32 %v891_v51, %v896_v8  ;;  %v1134_v51 = vld [vmem:[#allocation14 + $0x168] sm:$0xff]  ;;  %1161 = vmatpush.msrb.mxu0 %v1103_v52  ;;  %1209 = vmatpush.msrb.mxu2 %v1100_v4  ;;  %v1128_v8 = vld [vmem:[#allocation14 + $0x138] sm:$0xff] }
 0x2eb   : > { %1546 = vpow2.f32 %v1012_v5  ;;  %1231 = vmatpush.msrb.mxu3 %v1134_v51  ;;  %v1127_v5 = vld [vmem:[#allocation14 + $0x130] sm:$0xff] }
 0x2ec   : > { %v902_v9 = vmul.f32 1.442695, %v900_v2  ;;  %1162 = vmatpush.msrb.mxu0 %v1101_v57  ;;  %v1097_v2 = vld [vmem:[#allocation14 + $0x40] sm:$0xff] }
 0x2ee   : > { %1548 = vpow2.f32 %v902_v9  ;;  %1163 = vmatpush.msrb.mxu0 %v1099_v63  ;;  %v1098_v9 = vld [vmem:[#allocation14 + $0x48] sm:$0xff] }
 0x2ef   : > { %1210 = vmatpush.msrb.mxu2 %v1098_v9 }
 0x2f0   : > { %1164 = vmatpush.msrb.mxu0 %v1097_v2 }
 0x2f1   : > { %v1547_v12 = vpop.eup %1546 }
 0x2f2   : > { %1418 = vmatmul.msk.f32.vlgmr.msra.gmra.mxu3 %vm893_vm2, %v1547_v12  ;;  %v1016_v17 = vsel %vm893_vm2, %v1547_v12, 0.0  ;;  %v1096_v12 = vld [vmem:[#allocation14 + $0x38] sm:$0xff]  ;;  %1165 = vmatpush.msrb.mxu0 %v1095_v11 }
 0x2f3   : > { %1017 = vadd.xlane.f32.xlu1 %v1016_v17  ;;  %1211 = vmatpush.msrb.mxu2 %v1096_v12  ;;  %v1094_v17 = vld [vmem:[#allocation14 + $0x28] sm:$0xff] }
 0x2f4   : > { %v1549_v22 = vpop.eup %1548  ;;  %1166 = vmatpush.msrb.mxu0 %v1093_v7 }
 0x2f5   : > { %1416 = vmatmul.msk.f32.vlgmr.msra.gmra.mxu1 %vm893_vm2, %v1549_v22  ;;  %v906_v0 = vsel %vm893_vm2, %v1549_v22, 0.0  ;;  %1212 = vmatpush.msrb.mxu2 %v1094_v17  ;;  %v1091_v22 = vld [vmem:[#allocation14 + $0x10] sm:$0xff] }
 0x2f6   : > { %907 = vadd.xlane.f32.xlu0 %v906_v0  ;;  %1167 = vmatpush.msrb.mxu0 %v1091_v22  ;;  %v1090_v0 = vld [vmem:[#allocation14 + $0x8] sm:$0xff] }
 0x2f7   : > { %1213 = vmatpush.msrb.mxu2 %v1092_v23 }
 0x2f8   : > { %1168 = vmatpush.msrb.mxu0 %v1089_v24 }
 0x2f9   : > { %1214 = vmatpush.msrb.mxu2 %v1090_v0 }
 0x2fb   : > { %v1009_v32 = vpop.xlane.xlu2 %1008 }
 0x2fc   : > { %v1011_v46 = vsub.f32 %v2193_v19, %v1009_v32  ;;  %v1132_v19 = vld [vmem:[#allocation14 + $0x158] sm:$0xff] }
 0x2fd   : > { %1232 = vmatpush.msrb.mxu3 %v1132_v19 }
 0x2fe   : > { %v1014_v33 = vmul.f32 1.442695, %v1011_v46 }
 0x2ff   : > { %1233 = vmatpush.msrb.mxu3 %v1130_v62 }
 0x300   : > { %1550 = vpow2.f32 %v1014_v33 }
 0x301   : > { %1234 = vmatpush.msrb.mxu3 %v1128_v8 }
 0x303   : > { %v899_v34 = vpop.xlane.xlu2 %898  ;;  %1235 = vmatpush.msrb.mxu3 %v1126_v55 }
 0x304   : > { %v901_v35 = vsub.f32 %v2197_v59, %v899_v34  ;;  %v1129_v59 = vld [vmem:[#allocation14 + $0x140] sm:$0xff] }
 0x305   : > { %1187 = vmatpush.msrb.mxu1 %v1129_v59  ;;  %1236 = vmatpush.msrb.mxu3 %v1124_v16 }
 0x306   : > { %v1551_v36 = vpop.eup %1550  ;;  %v904_v37 = vmul.f32 1.442695, %v901_v35 }
 0x307   : > { %1419 = vmatmul.msk.f32.gmra.mxu3 %vm893_vm2, %v1551_v36  ;;  %v1019_v38 = vsel %vm893_vm2, %v1551_v36, 0.0  ;;  %1188 = vmatpush.msrb.mxu1 %v1127_v5 }
 0x308   : > { %1552 = vpow2.f32 %v904_v37  ;;  %1020 = vadd.xlane.f32.xlu0 %v1019_v38  ;;  %1237 = vmatpush.msrb.mxu3 %v1122_v21 }
 0x309   : > { %1189 = vmatpush.msrb.mxu1 %v1125_v10 }
 0x30b   : > { %1190 = vmatpush.msrb.mxu1 %v1123_v13 }
 0x30d   : > { %1191 = vmatpush.msrb.mxu1 %v1121_v20 }
 0x30e   : > { %v1553_v18 = vpop.eup %1552 }
 0x30f   : > { %1417 = vmatmul.msk.f32.gmra.mxu1 %vm893_vm2, %v1553_v18  ;;  %v909_v61 = vsel %vm893_vm2, %v1553_v18, 0.0 }
 0x310   : > { %910 = vadd.xlane.f32.xlu2 %v909_v61 }
 0x366   : > { %v1018_v1 = vpop.xlane.xlu1 %1017 }
 0x367   : > { %1554 = vrcp.f32 %v1018_v1  ;;  %v1064_v27 = vand.u32 2147483648, %v1018_v1  ;;  %v1062_v29 = vand.u32 2147483647, %v1018_v1  ;;  %vm1058_vm5 = vweird.f32 %v1018_v1 }
 0x369   : > { %v908_v14 = vpop.xlane.xlu0 %907  ;;  %v1065_v34 = vor.u32 1.1754944e-38, %v1064_v27  ;;  %vm1063_vm8 = vcmp.eq.f32.partialorder %v1062_v29, 8.507059e+37 }
 0x36a   : > { %1556 = vrcp.f32 %v908_v14  ;;  %v954_v31 = vand.u32 2147483648, %v908_v14  ;;  %v952_v33 = vand.u32 2147483647, %v908_v14  ;;  %vm948_vm9 = vweird.f32 %v908_v14 }
 0x36c   : > { %v955_v18 = vor.u32 1.1754944e-38, %v954_v31  ;;  %vm953_vm11 = vcmp.eq.f32.partialorder %v952_v33, 8.507059e+37 }
 0x36d   : > { %v1555_v15 = vpop.eup %1554 }
 0x36e   : > { %v1054_v25 = vmul.f32 %v1555_v15, %v1018_v1  ;;  %vm1059_vm4 = vweird.f32 %v1555_v15 }
 0x36f   : > { %vm1060_vm7 = vmor %vm1058_vm5, %vm1059_vm4 }
 0x370   : > { %v1557_v3 = vpop.eup %1556  ;;  %v1055_v26 = vsub.f32 1.0, %v1054_v25 }
 0x371   : > { %v944_v28 = vmul.f32 %v1557_v3, %v908_v14  ;;  %vm949_vm6 = vweird.f32 %v1557_v3 }
 0x372   : > { %v1056_v54 = vmul.f32 %v1555_v15, %v1055_v26  ;;  %vm950_vm10 = vmor %vm948_vm9, %vm949_vm6  ;;  %v937_v40 = vpop.f32.mrf.mxu1 }
 0x373   : > { %v945_v30 = vsub.f32 1.0, %v944_v28 }
 0x374   : > { %v1057_v32 = vadd.f32 %v1555_v15, %v1056_v54 }
 0x375   : > { %v946_v46 = vmul.f32 %v1557_v3, %v945_v30  ;;  %v1047_v37 = vpop.f32.mrf.mxu3 }
 0x376   : > { %v1061_v35 = vsel %vm1060_vm7, %v1555_v15, %v1057_v32 }
 0x377   : > { %v947_v36 = vadd.f32 %v1557_v3, %v946_v46  ;;  %v1066_v38 = vsel %vm1063_vm8, %v1065_v34, %v1061_v35 }
 0x378   : > { %v1081_v61 = vmul.f32 %v1066_v38, %v1047_v37 }
 0x379   : > { %v951_v39 = vsel %vm950_vm10, %v1557_v3, %v947_v36 }
 0x37a   : > { %v956_v41 = vsel %vm953_vm11, %v955_v18, %v951_v39  ;;  %1192 = vmatmul.f32.vlgmr.msrb.gmra.mxu1 %v1081_v61  ;;  %1238 = vmatmul.f32.vlgmr.msrb.gmra.mxu3 %v1081_v61 }
 0x37b   : > { %v971_v42 = vmul.f32 %v956_v41, %v937_v40  ;;  %v1021_v43 = vpop.xlane.xlu0 %1020 }
 0x37c   : > { %1558 = vrcp.f32 %v1021_v43  ;;  %v1078_v6 = vand.u32 2147483648, %v1021_v43  ;;  %v1076_v48 = vand.u32 2147483647, %v1021_v43  ;;  %vm1072_vm13 = vweird.f32 %v1021_v43 }
 0x37d   : > { %1169 = vmatmul.f32.vlgmr.msrb.gmra.mxu0 %v971_v42  ;;  %1215 = vmatmul.f32.vlgmr.msrb.gmra.mxu2 %v971_v42 }
 0x37e   : > { %v1079_v52 = vor.u32 1.1754944e-38, %v1078_v6  ;;  %vm1077_vm15 = vcmp.eq.f32.partialorder %v1076_v48, 8.507059e+37 }
 0x382   : > { %v1559_v60 = vpop.eup %1558 }
 0x383   : > { %v1068_v44 = vmul.f32 %v1559_v60, %v1021_v43  ;;  %v911_v45 = vpop.xlane.xlu2 %910  ;;  %vm1073_vm12 = vweird.f32 %v1559_v60 }
 0x384   : > { %1560 = vrcp.f32 %v911_v45  ;;  %vm1074_vm14 = vmor %vm1072_vm13, %vm1073_vm12  ;;  %v968_v62 = vand.u32 2147483648, %v911_v45  ;;  %v966_v4 = vand.u32 2147483647, %v911_v45  ;;  %vm962_vm1 = vweird.f32 %v911_v45 }
 0x385   : > { %v1069_v47 = vsub.f32 1.0, %v1068_v44 }
 0x386   : > { %v969_v8 = vor.u32 1.1754944e-38, %v968_v62  ;;  %vm967_vm3 = vcmp.eq.f32.partialorder %v966_v4, 8.507059e+37 }
 0x387   : > { %v1070_v50 = vmul.f32 %v1559_v60, %v1069_v47 }
 0x389   : > { %v1071_v49 = vadd.f32 %v1559_v60, %v1070_v50 }
 0x38a   : > { %v1561_v51 = vpop.eup %1560  ;;  %v1050_v19 = vpop.f32.mrf.mxu3 }
 0x38b   : > { %v958_v53 = vmul.f32 %v1561_v51, %v911_v45  ;;  %v1075_v56 = vsel %vm1074_vm14, %v1559_v60, %v1071_v49  ;;  %vm963_vm0 = vweird.f32 %v1561_v51 }
 0x38c   : > { %v1080_v57 = vsel %vm1077_vm15, %v1079_v52, %v1075_v56  ;;  %vm964_vm2 = vmor %vm962_vm1, %vm963_vm0  ;;  %v940_v9 = vpop.f32.mrf.mxu1 }
 0x38d   : > { %v959_v58 = vsub.f32 1.0, %v958_v53  ;;  %v1082_v59 = vmul.f32 %v1080_v57, %v1050_v19 }
 0x38f   : > { %v960_v63 = vmul.f32 %v1561_v51, %v959_v58  ;;  %1195 = vmatmul.f32.gmra.mxu1 %v1082_v59  ;;  %1241 = vmatmul.f32.gmra.mxu3 %v1082_v59 }
 0x391   : > { %v961_v5 = vadd.f32 %v1561_v51, %v960_v63 }
 0x393   : > { %v965_v2 = vsel %vm964_vm2, %v1561_v51, %v961_v5 }
 0x394   : > { %v970_v10 = vsel %vm967_vm3, %v969_v8, %v965_v2 }
 0x395   : > { %v972_v55 = vmul.f32 %v970_v10, %v940_v9 }
 0x397   : > { %1172 = vmatmul.f32.gmra.mxu0 %v972_v55  ;;  %1218 = vmatmul.f32.gmra.mxu2 %v972_v55 }
 0x3f7   : > { %v1193_v11 = vpop.f32.mrf.mxu1 }
 0x3fa   : > { %v1170_v12 = vpop.f32.mrf.mxu0 }
 0x3fb   : > { %v1194_v13 = vadd.f32 %v1193_v11, %v1170_v12 }
 0x3fd   : > { %1245 = vst [vmem:[%s397_s16] sm:$0xff] %v1194_v13  ;;  %v1239_v16 = vpop.f32.mrf.mxu3 }
 0x400   : > { %v1216_v7 = vpop.f32.mrf.mxu2 }
 0x401   : > { %v1240_v17 = vadd.f32 %v1239_v16, %v1216_v7 }
 0x403   : > { %1246 = vst [vmem:[%s397_s16 + $0x8] sm:$0xff] %v1240_v17 }
 0x40c   : > { %v1196_v20 = vpop.f32.mrf.mxu1 }
 0x412   : > { %v1242_v23 = vpop.f32.mrf.mxu3 }
 0x414   : > { %v1173_v21 = vpop.f32.mrf.mxu0 }
 0x415   : > { %v1197_v22 = vadd.f32 %v1196_v20, %v1173_v21 }
 0x417   : > { %1247 = vst [vmem:[%s397_s16 + $0x10] sm:$0xff] %v1197_v22 }
 0x41a   : > { %v1219_v24 = vpop.f32.mrf.mxu2 }
 0x41b   : > { %v1243_v0 = vadd.f32 %v1242_v23, %v1219_v24 }
 0x41d   : > { %1248 = vst [vmem:[%s397_s16 + $0x18] sm:$0xff] %v1243_v0 }
 0x41e   : > { %1799 = shalt.err (!%p1796_p9)
}
 0x41f   : > { %s1863_s20 = smov 256   ;;  %s1864_s9 = smov 16  }
 0x420   : > { %1453 = dma.vmem_to_hbm [thread:$0]  (%p2008_p4), %s1263_s10, 512, %s1265_s14, %s1250_s13, %s1863_s20, %s1863_s20, %s1864_s9  }
 0x421 PF: > { %s1279_s16 = sand.u32 1, %s1838_s24   ;;  %p2269_p10 = scmp.ge.s32.totalorder %s1850_s27, 2 }
 0x422   : > { %s1280_s17 = scalar_lea.sflag [#allocation8], %s1279_s16 }
 0x423   : > { %p1479_p13 = pnand %p2269_p10, %p2012_p6 }
 0x425   : > { %p1480_p11 = pneg %p1479_p13 }
 0x427   : > { %1833 = dma.done.wait (%p1480_p11), %s1280_s17, 512  }
 0x428   : > { %1835 = vsyncadd (%p1480_p11), %s1280_s17, 4294966784  ;;  %p23_p0 = scmp.ge.s32.totalorder %s1982_s18, 4   ;;  %s2270_s24 = smov %s1842_s25 }
 0x429   : > { %s2271_s25 = smov %s1846_s26  ;;  %s2272_s26 = smov %s1993_s15 }
 0x42a   : > { %s2273_s27 = smov %s1982_s18  ;;  %25 = sbr.rel (!%p23_p0) target bundleno = 11 (0xb), region = 117 }
 0x42f   :  { %1286 = vsyncpa [#allocation7], 1 }
 0x430   :  { %1288 = vsyncpa [#allocation7 + $0x1], 1 }
 0x431   :  { %1289 = vsyncpa [#allocation10], 1 }
 0x432   :  { %1290 = vsyncpa [#allocation13], 1 }
 0x433   :  { %1291 = vsyncpa [#allocation16], 1 }
 0x434   :  { %1292 = vsyncpa [#allocation8], 1 }
 0x435   :  { %1294 = vsyncpa [#allocation8 + $0x1], 1 }

</bundles_post_ra>
